<compile_context>
chip_gen: v7x
topology: tpu7x:2x2x1
jax: 0.10.0
libtpu: 0.0.40
codegen_flags: <defaults>
</compile_context>

<pallas_src>
import math
import jax
import jax.numpy as jnp
from jax.experimental import pallas as pl
from jax.experimental.pallas import tpu as pltpu  # noqa: F401  (used for prod-size tiling)

B, T, D, H = 2, 8, 32, 4
DH = D // H
BT = B * T
FFN = 4 * D
LN_EPS = 1e-5
NEG_INF = -1e9
PACK_LANES = 128

# rows inside the packed (8 + B*T, 128) small-operand block
ROW_LN1_G, ROW_LN1_B, ROW_BQKV, ROW_BO = 0, 1, 2, 3
ROW_LN2_G, ROW_LN2_B, ROW_B1, ROW_B2 = 4, 5, 6, 7
ROW_MASK = 8                    # rows 8 .. 8+BT-1 : additive key bias, (b*T+k, h) layout
PACK_ROWS = ROW_MASK + BT       # 24

# lane offsets inside the fused weight slab [ wq*scale | wk | wv | wo | w1 ]
COL_QKV, COL_WO, COL_W1 = 0, 3 * D, 4 * D
SLAB_COLS = 4 * D + FFN         # 256 lanes (lane-dense)


def encoder_layer_kernel(x_ref, pk_ref, wslab_ref, w2_ref, out_ref):
    f32 = jnp.float32
    mm_dtype = wslab_ref.dtype              # float32, or bfloat16 on the low-DMA path

    x = x_ref[...].astype(f32)              # (BT, D) -- batch folded into rows

    def layer_norm(v, g_row, b_row):
        g = pk_ref[g_row:g_row + 1, :D]
        b = pk_ref[b_row:b_row + 1, :D]
        mu = jnp.mean(v, axis=-1, keepdims=True)
        var = jnp.mean((v - mu) ** 2, axis=-1, keepdims=True)
        return (v - mu) * jax.lax.rsqrt(var + LN_EPS) * g + b

    # block-diagonal head selectors (constant, built from 2-D iotas: no extra DMA)
    d_dh = jax.lax.broadcasted_iota(jnp.int32, (D, H), 0)
    h_dh = jax.lax.broadcasted_iota(jnp.int32, (D, H), 1)
    sel_dh = ((d_dh >= h_dh * DH) & (d_dh < (h_dh + 1) * DH)).astype(f32)   # (D, H)
    h_hd = jax.lax.broadcasted_iota(jnp.int32, (H, D), 0)
    d_hd = jax.lax.broadcasted_iota(jnp.int32, (H, D), 1)
    sel_hd = ((d_hd >= h_hd * DH) & (d_hd < (h_hd + 1) * DH)).astype(f32)   # (H, D)

    # ---- attention sub-block: x + Wo( MHA( LayerNorm(x) ) ) ----
    h1 = layer_norm(x, ROW_LN1_G, ROW_LN1_B)
    proj = jnp.dot(h1.astype(mm_dtype), wslab_ref[:, COL_QKV:COL_QKV + 3 * D],
                   preferred_element_type=f32)                              # (BT, 3D)
    proj = proj + pk_ref[ROW_BQKV:ROW_BQKV + 1, :3 * D]

    # batch-major 3-D views (major/sublane splits only; lanes untouched)
    q3 = proj[:, 0 * D:1 * D].reshape(B, T, D)   # 1/sqrt(DH) already folded into wq/bq
    k3 = proj[:, 1 * D:2 * D].reshape(B, T, D)
    v3 = proj[:, 2 * D:3 * D].reshape(B, T, D)

    # per-head scores without any head slicing/stacking:
    #   prod[b,q,k,d] = q[b,q,d] * k[b,k,d]           (VPU broadcast multiply)
    #   s[b,q,k,h]    = sum_{d in head h} prod        (one MXU push vs. selector)
    prod = q3[:, :, None, :] * k3[:, None, :, :]                            # (B,Tq,Tk,D)
    s = jnp.dot(prod.reshape(BT * T, D), sel_dh,
                preferred_element_type=f32).reshape(B, T, T, H)             # (B,Tq,Tk,H)

    # additive key-padding bias (0 valid / -1e9 pad), broadcast over query rows
    mask_bias = pk_ref[ROW_MASK:ROW_MASK + BT, :H].reshape(B, T, H)         # (B,Tk,H)
    s = s + mask_bias[:, None, :, :]

    # softmax over the key axis (axis=2); approx reciprocal runs on the EUP slot
    s = s - jnp.max(s, axis=2, keepdims=True)
    p = jnp.exp(s)
    p = p * pl.reciprocal(jnp.sum(p, axis=2, keepdims=True), approx=True)

    # context: expand per-head probs back onto their DH lanes (one MXU push),
    # then a VPU weighted sum over keys -- no head regroup / concat needed.
    p_exp = jnp.dot(p.reshape(BT * T, H), sel_hd,
                    preferred_element_type=f32).reshape(B, T, T, D)         # (B,Tq,Tk,D)
    ctx = jnp.sum(p_exp * v3[:, None, :, :], axis=2)                        # (B,Tq,D)
    ctx_full = ctx.reshape(BT, D)

    attn = jnp.dot(ctx_full.astype(mm_dtype), wslab_ref[:, COL_WO:COL_WO + D],
                   preferred_element_type=f32)
    x1 = x + attn + pk_ref[ROW_BO:ROW_BO + 1, :D]

    # ---- ffn sub-block: x1 + W2( relu( W1( LayerNorm(x1) ) ) ) ----
    h2 = layer_norm(x1, ROW_LN2_G, ROW_LN2_B)
    f = jnp.dot(h2.astype(mm_dtype), wslab_ref[:, COL_W1:COL_W1 + FFN],
                preferred_element_type=f32)
    f = jnp.maximum(f + pk_ref[ROW_B1:ROW_B1 + 1, :FFN], 0.0)
    f = jnp.dot(f.astype(mm_dtype), w2_ref[...], preferred_element_type=f32)
    out_ref[...] = (x1 + f + pk_ref[ROW_B2:ROW_B2 + 1, :D]).astype(out_ref.dtype)


def transformer_encoder_layer(x, xm, params, weight_dtype=jnp.float32):
    """x: (B, T, D) f32; xm: (B, 1, T) key mask (1 = valid, 0 = pad). Returns (B, T, D) f32."""
    (ln1_g, ln1_b, wq, bq, wk, bk, wv, bv, wo, bo,
     ln2_g, ln2_b, w1, b1, w2, b2) = params

    scale = 1.0 / math.sqrt(DH)
    # ONE lane-dense (D, 256) weight slab: [ wq*scale | wk | wv | wo | w1 ]
    wslab = jnp.concatenate([wq * scale, wk, wv, wo, w1], axis=1)
    assert wslab.shape == (D, SLAB_COLS)

    def row(v):                                                  # (1, n) -> (1, 128)
        return jnp.pad(v.astype(jnp.float32),
                       ((0, 0), (0, PACK_LANES - v.shape[-1])))

    # key-padding mask -> additive bias rows, stored (b*T + k, h) so the kernel can
    # view them as (B, 1, Tk, H) without any lane<->sublane relayout
    key_bias = jnp.where(xm[:, 0, :] > 0.0, 0.0, NEG_INF).astype(jnp.float32)   # (B, T)
    mask_rows = jnp.broadcast_to(key_bias.reshape(BT, 1), (BT, H))
    mask_rows = jnp.pad(mask_rows, ((0, 0), (0, PACK_LANES - H)))

    # one lane-dense (24, 128) block holding every small operand (single DMA)
    packed = jnp.concatenate(
        [row(ln1_g), row(ln1_b),
         row(jnp.concatenate([bq * scale, bk, bv], axis=1)), row(bo),
         row(ln2_g), row(ln2_b), row(b1), row(b2),
         mask_rows], axis=0)
    assert packed.shape == (PACK_ROWS, PACK_LANES)

    out = pl.pallas_call(
        encoder_layer_kernel,
        out_shape=jax.ShapeDtypeStruct((BT, D), jnp.float32),
        # single invocation, no grid: every operand is one full-array VMEM block
        # (~100 KiB total, far below the default scoped VMEM limit on every gen).
    )(x.reshape(BT, D), packed, wslab.astype(weight_dtype), w2.astype(weight_dtype))
    return out.reshape(B, T, D)


def reference(x, xm, params):
    (ln1_g, ln1_b, wq, bq, wk, bk, wv, bv, wo, bo,
     ln2_g, ln2_b, w1, b1, w2, b2) = params

    def layer_norm(v, g, b):
        mu = v.mean(-1, keepdims=True)
        var = ((v - mu) ** 2).mean(-1, keepdims=True)
        return (v - mu) * jax.lax.rsqrt(var + LN_EPS) * g + b

    h = layer_norm(x, ln1_g, ln1_b)
    q = h @ wq + bq
    k = h @ wk + bk
    v = h @ wv + bv
    qh = q.reshape(B, T, H, DH).transpose(0, 2, 1, 3)
    kh = k.reshape(B, T, H, DH).transpose(0, 2, 1, 3)
    vh = v.reshape(B, T, H, DH).transpose(0, 2, 1, 3)
    s = jnp.einsum('bhtd,bhsd->bhts', qh, kh) / math.sqrt(DH)
    mask = (xm > 0.0)[:, :, None, :]                     # (B,1,1,T)
    s = jnp.where(mask, s, NEG_INF)
    p = jax.nn.softmax(s, axis=-1)
    ctx = jnp.einsum('bhts,bhsd->bhtd', p, vh).transpose(0, 2, 1, 3).reshape(B, T, D)
    x1 = x + ctx @ wo + bo
    h2 = layer_norm(x1, ln2_g, ln2_b)
    f = jnp.maximum(h2 @ w1 + b1, 0.0) @ w2 + b2
    return x1 + f


def init_params(key):
    ks = jax.random.split(key, 16)

    def lin(k, fan_in, shape):
        return jax.random.normal(k, shape, jnp.float32) / math.sqrt(fan_in)

    ln1_g = jnp.ones((1, D), jnp.float32)
    ln1_b = jnp.zeros((1, D), jnp.float32)
    wq = lin(ks[0], D, (D, D)); bq = 0.1 * jax.random.normal(ks[1], (1, D), jnp.float32)
    wk = lin(ks[2], D, (D, D)); bk = 0.1 * jax.random.normal(ks[3], (1, D), jnp.float32)
    wv = lin(ks[4], D, (D, D)); bv = 0.1 * jax.random.normal(ks[5], (1, D), jnp.float32)
    wo = lin(ks[6], D, (D, D)); bo = 0.1 * jax.random.normal(ks[7], (1, D), jnp.float32)
    ln2_g = jnp.ones((1, D), jnp.float32)
    ln2_b = jnp.zeros((1, D), jnp.float32)
    w1 = lin(ks[8], D, (D, FFN)); b1 = 0.1 * jax.random.normal(ks[9], (1, FFN), jnp.float32)
    w2 = lin(ks[10], FFN, (FFN, D)); b2 = 0.1 * jax.random.normal(ks[11], (1, D), jnp.float32)
    return (ln1_g, ln1_b, wq, bq, wk, bk, wv, bv, wo, bo,
            ln2_g, ln2_b, w1, b1, w2, b2)


def _round_weights_to_bf16(params):
    weight_idx = {2, 4, 6, 8, 12, 14}        # wq, wk, wv, wo, w1, w2
    return tuple(p.astype(jnp.bfloat16).astype(jnp.float32) if i in weight_idx else p
                 for i, p in enumerate(params))


if __name__ == "__main__":
    root = jax.random.PRNGKey(0)
    k_x, k_p = jax.random.split(root)
    x = jax.random.normal(k_x, (B, T, D), jnp.float32)
    # batch 0 fully valid, batch 1 has 2 padded (masked) key positions
    xm = jnp.array([[[1, 1, 1, 1, 1, 1, 1, 1]],
                    [[1, 1, 1, 1, 1, 1, 0, 0]]], dtype=jnp.float32)
    params = init_params(k_p)

    # f32 path (matches the PyTorch module in eval mode); tolerance allows for the
    # approximate-reciprocal softmax denominator and MXU default f32 precision.
    out = jax.block_until_ready(transformer_encoder_layer(x, xm, params))
    ref = reference(x, xm, params)
    assert out.shape == (B, T, D)
    assert jnp.allclose(out, ref, atol=3e-3, rtol=3e-3), "f32 kernel mismatch vs JAX reference"

    # bf16-weight path (recommended on v5e/v6e/v7x: halved weight DMA, bf16 MXU +
    # f32 accumulation); compared against a reference using bf16-rounded weights.
    out_bf16 = jax.block_until_ready(
        transformer_encoder_layer(x, xm, params, weight_dtype=jnp.bfloat16))
    ref_bf16 = reference(x, xm, _round_weights_to_bf16(params))
    assert jnp.allclose(out_bf16, ref_bf16, atol=5e-2, rtol=5e-2), "bf16 kernel mismatch"

    print("KERNEL_OK")
</pallas_src>

<mosaic_0001>
module attributes {stable_mosaic.version = 11 : i64} {
  func.func @encoder_layer_kernel(%arg0: memref<16x32xf32, #tpu.memory_space<vmem>>, %arg1: memref<24x128xf32, #tpu.memory_space<vmem>>, %arg2: memref<32x256xf32, #tpu.memory_space<vmem>>, %arg3: memref<128x32xf32, #tpu.memory_space<vmem>>, %arg4: memref<16x32xf32, #tpu.memory_space<vmem>>) attributes {dimension_semantics = [], scalar_prefetch = 0 : i64, scratch_operands = 0 : i64, tpu.core_type = #tpu.core_type<tc>} {
    %c0 = arith.constant 0 : index
    %c0_0 = arith.constant 0 : index
    %0 = vector.load %arg0[%c0, %c0_0] : memref<16x32xf32, #tpu.memory_space<vmem>>, vector<16x32xf32>
    %1 = tpu.iota {dimensions = array<i32: 0>} : vector<32x4xi32>
    %2 = tpu.iota {dimensions = array<i32: 1>} : vector<32x4xi32>
    %c8_i32 = arith.constant 8 : i32
    %3 = vector.broadcast %c8_i32 : i32 to vector<32x4xi32>
    %4 = arith.muli %2, %3 : vector<32x4xi32>
    %5 = arith.cmpi sge, %1, %4 : vector<32x4xi32>
    %c1_i32 = arith.constant 1 : i32
    %6 = vector.broadcast %c1_i32 : i32 to vector<32x4xi32>
    %7 = arith.addi %2, %6 : vector<32x4xi32>
    %c8_i32_1 = arith.constant 8 : i32
    %8 = vector.broadcast %c8_i32_1 : i32 to vector<32x4xi32>
    %9 = arith.muli %7, %8 : vector<32x4xi32>
    %10 = arith.cmpi slt, %1, %9 : vector<32x4xi32>
    %11 = arith.andi %5, %10 : vector<32x4xi1>
    %12 = arith.extui %11 : vector<32x4xi1> to vector<32x4xi32>
    %13 = arith.sitofp %12 : vector<32x4xi32> to vector<32x4xf32>
    %14 = tpu.iota {dimensions = array<i32: 0>} : vector<4x32xi32>
    %15 = tpu.iota {dimensions = array<i32: 1>} : vector<4x32xi32>
    %c8_i32_2 = arith.constant 8 : i32
    %16 = vector.broadcast %c8_i32_2 : i32 to vector<4x32xi32>
    %17 = arith.muli %14, %16 : vector<4x32xi32>
    %18 = arith.cmpi sge, %15, %17 : vector<4x32xi32>
    %c1_i32_3 = arith.constant 1 : i32
    %19 = vector.broadcast %c1_i32_3 : i32 to vector<4x32xi32>
    %20 = arith.addi %14, %19 : vector<4x32xi32>
    %c8_i32_4 = arith.constant 8 : i32
    %21 = vector.broadcast %c8_i32_4 : i32 to vector<4x32xi32>
    %22 = arith.muli %20, %21 : vector<4x32xi32>
    %23 = arith.cmpi slt, %15, %22 : vector<4x32xi32>
    %24 = arith.andi %18, %23 : vector<4x32xi1>
    %25 = arith.extui %24 : vector<4x32xi1> to vector<4x32xi32>
    %26 = arith.sitofp %25 : vector<4x32xi32> to vector<4x32xf32>
    %c0_5 = arith.constant 0 : index
    %c0_6 = arith.constant 0 : index
    %27 = vector.load %arg1[%c0_5, %c0_6] : memref<24x128xf32, #tpu.memory_space<vmem>>, vector<1x32xf32>
    %c1 = arith.constant 1 : index
    %c0_7 = arith.constant 0 : index
    %28 = vector.load %arg1[%c1, %c0_7] : memref<24x128xf32, #tpu.memory_space<vmem>>, vector<1x32xf32>
    %cst = arith.constant dense<0.000000e+00> : vector<16xf32>
    %29 = vector.multi_reduction <add>, %0, %cst [1] : vector<16x32xf32> to vector<16xf32>
    %30 = vector.shape_cast %29 : vector<16xf32> to vector<16x1xf32>
    %cst_8 = arith.constant 3.200000e+01 : f32
    %31 = vector.broadcast %cst_8 : f32 to vector<16x1xf32>
    %32 = arith.divf %30, %31 : vector<16x1xf32>
    %33 = vector.broadcast %32 : vector<16x1xf32> to vector<16x32xf32>
    %34 = arith.subf %0, %33 : vector<16x32xf32>
    %35 = arith.mulf %34, %34 : vector<16x32xf32>
    %cst_9 = arith.constant dense<0.000000e+00> : vector<16xf32>
    %36 = vector.multi_reduction <add>, %35, %cst_9 [1] : vector<16x32xf32> to vector<16xf32>
    %37 = vector.shape_cast %36 : vector<16xf32> to vector<16x1xf32>
    %cst_10 = arith.constant 3.200000e+01 : f32
    %38 = vector.broadcast %cst_10 : f32 to vector<16x1xf32>
    %39 = arith.divf %37, %38 : vector<16x1xf32>
    %40 = vector.broadcast %32 : vector<16x1xf32> to vector<16x32xf32>
    %41 = arith.subf %0, %40 : vector<16x32xf32>
    %cst_11 = arith.constant 9.99999974E-6 : f32
    %42 = vector.broadcast %cst_11 : f32 to vector<16x1xf32>
    %43 = arith.addf %39, %42 : vector<16x1xf32>
    %44 = math.rsqrt %43 : vector<16x1xf32>
    %45 = vector.broadcast %44 : vector<16x1xf32> to vector<16x32xf32>
    %46 = arith.mulf %41, %45 : vector<16x32xf32>
    %47 = vector.broadcast %27 : vector<1x32xf32> to vector<16x32xf32>
    %48 = arith.mulf %46, %47 : vector<16x32xf32>
    %49 = vector.broadcast %28 : vector<1x32xf32> to vector<16x32xf32>
    %50 = arith.addf %48, %49 : vector<16x32xf32>
    %c0_12 = arith.constant 0 : index
    %c0_13 = arith.constant 0 : index
    %51 = vector.load %arg2[%c0_12, %c0_13] : memref<32x256xf32, #tpu.memory_space<vmem>>, vector<32x96xf32>
    %cst_14 = arith.constant dense<0.000000e+00> : vector<16x96xf32>
    %52 = tpu.matmul %50, %51, %cst_14 {dimension_numbers = #tpu.dot_dimension_numbers<[1], [0], [0], [1], [0, 0, 1, 1], [], []>} : vector<16x32xf32>, vector<32x96xf32>, vector<16x96xf32> -> vector<16x96xf32>
    %c2 = arith.constant 2 : index
    %c0_15 = arith.constant 0 : index
    %53 = vector.load %arg1[%c2, %c0_15] : memref<24x128xf32, #tpu.memory_space<vmem>>, vector<1x96xf32>
    %54 = vector.broadcast %53 : vector<1x96xf32> to vector<16x96xf32>
    %55 = arith.addf %52, %54 : vector<16x96xf32>
    %56 = vector.extract_strided_slice %55 {offsets = [0, 0], sizes = [16, 32], strides = [1, 1]} : vector<16x96xf32> to vector<16x32xf32>
    %57 = vector.shape_cast %56 : vector<16x32xf32> to vector<2x8x32xf32>
    %58 = vector.extract_strided_slice %55 {offsets = [0, 32], sizes = [16, 32], strides = [1, 1]} : vector<16x96xf32> to vector<16x32xf32>
    %59 = vector.shape_cast %58 : vector<16x32xf32> to vector<2x8x32xf32>
    %60 = vector.extract_strided_slice %55 {offsets = [0, 64], sizes = [16, 32], strides = [1, 1]} : vector<16x96xf32> to vector<16x32xf32>
    %61 = vector.shape_cast %60 : vector<16x32xf32> to vector<2x8x32xf32>
    %62 = vector.shape_cast %57 : vector<2x8x32xf32> to vector<2x8x1x32xf32>
    %63 = vector.shape_cast %59 : vector<2x8x32xf32> to vector<2x1x8x32xf32>
    %64 = vector.broadcast %62 : vector<2x8x1x32xf32> to vector<2x8x8x32xf32>
    %65 = vector.broadcast %63 : vector<2x1x8x32xf32> to vector<2x8x8x32xf32>
    %66 = arith.mulf %64, %65 : vector<2x8x8x32xf32>
    %67 = vector.shape_cast %66 : vector<2x8x8x32xf32> to vector<128x32xf32>
    %cst_16 = arith.constant dense<0.000000e+00> : vector<128x4xf32>
    %68 = tpu.matmul %67, %13, %cst_16 {dimension_numbers = #tpu.dot_dimension_numbers<[1], [0], [0], [1], [0, 0, 1, 1], [], []>} : vector<128x32xf32>, vector<32x4xf32>, vector<128x4xf32> -> vector<128x4xf32>
    %69 = vector.shape_cast %68 : vector<128x4xf32> to vector<2x8x8x4xf32>
    %c8 = arith.constant 8 : index
    %c0_17 = arith.constant 0 : index
    %70 = vector.load %arg1[%c8, %c0_17] : memref<24x128xf32, #tpu.memory_space<vmem>>, vector<16x4xf32>
    %71 = vector.shape_cast %70 : vector<16x4xf32> to vector<2x8x4xf32>
    %72 = vector.shape_cast %71 : vector<2x8x4xf32> to vector<2x1x8x4xf32>
    %73 = vector.broadcast %72 : vector<2x1x8x4xf32> to vector<2x8x8x4xf32>
    %74 = arith.addf %69, %73 : vector<2x8x8x4xf32>
    %cst_18 = arith.constant dense<0xFF800000> : vector<2x8x4xf32>
    %75 = vector.multi_reduction <maximumf>, %74, %cst_18 [2] : vector<2x8x8x4xf32> to vector<2x8x4xf32>
    %76 = vector.shape_cast %75 : vector<2x8x4xf32> to vector<2x8x1x4xf32>
    %77 = vector.broadcast %76 : vector<2x8x1x4xf32> to vector<2x8x8x4xf32>
    %78 = arith.subf %74, %77 : vector<2x8x8x4xf32>
    %79 = math.exp %78 : vector<2x8x8x4xf32>
    %cst_19 = arith.constant dense<0.000000e+00> : vector<2x8x4xf32>
    %80 = vector.multi_reduction <add>, %79, %cst_19 [2] : vector<2x8x8x4xf32> to vector<2x8x4xf32>
    %81 = vector.shape_cast %80 : vector<2x8x4xf32> to vector<2x8x1x4xf32>
    %82 = tpu.reciprocal %81 {approx = true} : vector<2x8x1x4xf32> -> vector<2x8x1x4xf32>
    %83 = vector.broadcast %82 : vector<2x8x1x4xf32> to vector<2x8x8x4xf32>
    %84 = arith.mulf %79, %83 : vector<2x8x8x4xf32>
    %85 = vector.shape_cast %84 : vector<2x8x8x4xf32> to vector<128x4xf32>
    %cst_20 = arith.constant dense<0.000000e+00> : vector<128x32xf32>
    %86 = tpu.matmul %85, %26, %cst_20 {dimension_numbers = #tpu.dot_dimension_numbers<[1], [0], [0], [1], [0, 0, 1, 1], [], []>} : vector<128x4xf32>, vector<4x32xf32>, vector<128x32xf32> -> vector<128x32xf32>
    %87 = vector.shape_cast %86 : vector<128x32xf32> to vector<2x8x8x32xf32>
    %88 = vector.shape_cast %61 : vector<2x8x32xf32> to vector<2x1x8x32xf32>
    %89 = vector.broadcast %88 : vector<2x1x8x32xf32> to vector<2x8x8x32xf32>
    %90 = arith.mulf %87, %89 : vector<2x8x8x32xf32>
    %cst_21 = arith.constant dense<0.000000e+00> : vector<2x8x32xf32>
    %91 = vector.multi_reduction <add>, %90, %cst_21 [2] : vector<2x8x8x32xf32> to vector<2x8x32xf32>
    %92 = vector.shape_cast %91 : vector<2x8x32xf32> to vector<16x32xf32>
    %c0_22 = arith.constant 0 : index
    %c96 = arith.constant 96 : index
    %93 = vector.load %arg2[%c0_22, %c96] : memref<32x256xf32, #tpu.memory_space<vmem>>, vector<32x32xf32>
    %cst_23 = arith.constant dense<0.000000e+00> : vector<16x32xf32>
    %94 = tpu.matmul %92, %93, %cst_23 {dimension_numbers = #tpu.dot_dimension_numbers<[1], [0], [0], [1], [0, 0, 1, 1], [], []>} : vector<16x32xf32>, vector<32x32xf32>, vector<16x32xf32> -> vector<16x32xf32>
    %95 = arith.addf %0, %94 : vector<16x32xf32>
    %c3 = arith.constant 3 : index
    %c0_24 = arith.constant 0 : index
    %96 = vector.load %arg1[%c3, %c0_24] : memref<24x128xf32, #tpu.memory_space<vmem>>, vector<1x32xf32>
    %97 = vector.broadcast %96 : vector<1x32xf32> to vector<16x32xf32>
    %98 = arith.addf %95, %97 : vector<16x32xf32>
    %c4 = arith.constant 4 : index
    %c0_25 = arith.constant 0 : index
    %99 = vector.load %arg1[%c4, %c0_25] : memref<24x128xf32, #tpu.memory_space<vmem>>, vector<1x32xf32>
    %c5 = arith.constant 5 : index
    %c0_26 = arith.constant 0 : index
    %100 = vector.load %arg1[%c5, %c0_26] : memref<24x128xf32, #tpu.memory_space<vmem>>, vector<1x32xf32>
    %cst_27 = arith.constant dense<0.000000e+00> : vector<16xf32>
    %101 = vector.multi_reduction <add>, %98, %cst_27 [1] : vector<16x32xf32> to vector<16xf32>
    %102 = vector.shape_cast %101 : vector<16xf32> to vector<16x1xf32>
    %cst_28 = arith.constant 3.200000e+01 : f32
    %103 = vector.broadcast %cst_28 : f32 to vector<16x1xf32>
    %104 = arith.divf %102, %103 : vector<16x1xf32>
    %105 = vector.broadcast %104 : vector<16x1xf32> to vector<16x32xf32>
    %106 = arith.subf %98, %105 : vector<16x32xf32>
    %107 = arith.mulf %106, %106 : vector<16x32xf32>
    %cst_29 = arith.constant dense<0.000000e+00> : vector<16xf32>
    %108 = vector.multi_reduction <add>, %107, %cst_29 [1] : vector<16x32xf32> to vector<16xf32>
    %109 = vector.shape_cast %108 : vector<16xf32> to vector<16x1xf32>
    %cst_30 = arith.constant 3.200000e+01 : f32
    %110 = vector.broadcast %cst_30 : f32 to vector<16x1xf32>
    %111 = arith.divf %109, %110 : vector<16x1xf32>
    %112 = vector.broadcast %104 : vector<16x1xf32> to vector<16x32xf32>
    %113 = arith.subf %98, %112 : vector<16x32xf32>
    %cst_31 = arith.constant 9.99999974E-6 : f32
    %114 = vector.broadcast %cst_31 : f32 to vector<16x1xf32>
    %115 = arith.addf %111, %114 : vector<16x1xf32>
    %116 = math.rsqrt %115 : vector<16x1xf32>
    %117 = vector.broadcast %116 : vector<16x1xf32> to vector<16x32xf32>
    %118 = arith.mulf %113, %117 : vector<16x32xf32>
    %119 = vector.broadcast %99 : vector<1x32xf32> to vector<16x32xf32>
    %120 = arith.mulf %118, %119 : vector<16x32xf32>
    %121 = vector.broadcast %100 : vector<1x32xf32> to vector<16x32xf32>
    %122 = arith.addf %120, %121 : vector<16x32xf32>
    %c0_32 = arith.constant 0 : index
    %c128 = arith.constant 128 : index
    %123 = vector.load %arg2[%c0_32, %c128] : memref<32x256xf32, #tpu.memory_space<vmem>>, vector<32x128xf32>
    %cst_33 = arith.constant dense<0.000000e+00> : vector<16x128xf32>
    %124 = tpu.matmul %122, %123, %cst_33 {dimension_numbers = #tpu.dot_dimension_numbers<[1], [0], [0], [1], [0, 0, 1, 1], [], []>} : vector<16x32xf32>, vector<32x128xf32>, vector<16x128xf32> -> vector<16x128xf32>
    %c6 = arith.constant 6 : index
    %c0_34 = arith.constant 0 : index
    %125 = vector.load %arg1[%c6, %c0_34] : memref<24x128xf32, #tpu.memory_space<vmem>>, vector<1x128xf32>
    %126 = vector.broadcast %125 : vector<1x128xf32> to vector<16x128xf32>
    %127 = arith.addf %124, %126 : vector<16x128xf32>
    %cst_35 = arith.constant 0.000000e+00 : f32
    %128 = vector.broadcast %cst_35 : f32 to vector<16x128xf32>
    %129 = arith.maximumf %127, %128 : vector<16x128xf32>
    %c0_36 = arith.constant 0 : index
    %c0_37 = arith.constant 0 : index
    %130 = vector.load %arg3[%c0_36, %c0_37] : memref<128x32xf32, #tpu.memory_space<vmem>>, vector<128x32xf32>
    %cst_38 = arith.constant dense<0.000000e+00> : vector<16x32xf32>
    %131 = tpu.matmul %129, %130, %cst_38 {dimension_numbers = #tpu.dot_dimension_numbers<[1], [0], [0], [1], [0, 0, 1, 1], [], []>} : vector<16x128xf32>, vector<128x32xf32>, vector<16x32xf32> -> vector<16x32xf32>
    %132 = arith.addf %98, %131 : vector<16x32xf32>
    %c7 = arith.constant 7 : index
    %c0_39 = arith.constant 0 : index
    %133 = vector.load %arg1[%c7, %c0_39] : memref<24x128xf32, #tpu.memory_space<vmem>>, vector<1x32xf32>
    %134 = vector.broadcast %133 : vector<1x32xf32> to vector<16x32xf32>
    %135 = arith.addf %132, %134 : vector<16x32xf32>
    %c0_40 = arith.constant 0 : index
    %c0_41 = arith.constant 0 : index
    %136 = vector.load %arg4[%c0_40, %c0_41] : memref<16x32xf32, #tpu.memory_space<vmem>>, vector<16x32xf32>
    tpu.vector_store %arg4[%c0_40, %c0_41], %135 {strides = array<i32>} : memref<16x32xf32, #tpu.memory_space<vmem>>, vector<16x32xf32>,
    return
  }
}

</mosaic_0001>

<bundles_post_ra>
// kernel: tpu_custom_call.1
= control target key start
LH: loop header
LB: loop body
LE: loop exit
PB: predicated region body
PF: predicated region fallthrough
CT: control target
= control target key end

     0   :  { %vm60_vm0 = vcmask 261120   ;;  %s2579_s0 = inlined_call_operand.vmem [shape: f32[16,32], index: 0, kind: input, shape index: {}]   ;;  %s2580_s1 = inlined_call_operand.vmem [shape: f32[24,128], index: 1, kind: input, shape index: {}]   ;;  %s2581_s2 = inlined_call_operand.vmem [shape: f32[32,256], index: 2, kind: input, shape index: {}]   ;;  %s2582_s3 = inlined_call_operand.vmem [shape: f32[128,32], index: 3, kind: input, shape index: {}]   ;;  %s2583_s4 = inlined_call_operand.hbm [shape: f32[16,32], index: 4, kind: output, shape index: {}]  }
   0x1   :  { %v18_v0 = vld [vmem:[%s2579_s0] sm:$0xff]  ;;  %v19_v1 = vld [vmem:[%s2579_s0 + $0x8] sm:$0xff] }
   0x2   :  { %9 = vsyncpa [#allocation3], 0  ;;  %v61_v2 = vsel %vm60_vm0, %v18_v0, 0.0  ;;  %v64_v3 = vsel %vm60_vm0, %v19_v1, 0.0  ;;  %v2117_v14 = vld [vmem:[%s2581_s2] sm:$0xff]  ;;  %v2122_v15 = vld [vmem:[%s2581_s2 + $0x10] sm:$0xff]  ;;  %v20_v36 = vlaneseq }
   0x3   :  { %62 = vadd.xlane.f32.xlu0 %v61_v2  ;;  %v2127_v16 = vld [vmem:[%s2581_s2 + $0x20] sm:$0xff]  ;;  %v1889_v17 = vpack.c.bf16 %v2122_v15, %v2117_v14  ;;  %v2134_v18 = vld [vmem:[%s2581_s2 + $0x30] sm:$0xff]  ;;  %v2070_v43 = vmov 1.0|1.0   ;;  %s2071_s7 = smov 96   ;;  %s2072_s8 = smov 64  }
   0x4   :  { %v1893_v19 = vpack.c.bf16 %v2134_v18, %v2127_v16  ;;  %v1639_v27 = vld [vmem:[%s2580_s1] ss:$0 sm:$0xff]  ;;  %v1640_v29 = vld [vmem:[%s2580_s1 + $0x1] ss:$0 sm:$0xff]  ;;  %v2146_v37 = vshrl.u32 %v20_v36, 7  ;;  %v2148_v38 = vand.u32 127, %v20_v36 }
   0x5   :  { %1890 = vmatprep.subr.bf16.mxu1 %v1889_v17  ;;  %v1641_v46 = vld [vmem:[%s2580_s1 + $0x2] ss:$0 sm:$0xff]  ;;  %v2073_v51 = vmov 1966171168   ;;  %s2075_s9 = smov 32  }
   0x6   :  { %1892 = vmatpush3.bf16.msra.mxu1 %v1889_v17  ;;  %v22_v39 = vadd.s32 8, %v2146_v37  ;;  %v27_v40 = vmul.u32 8, %v2148_v38  ;;  %v32_v41 = vadd.s32 1, %v2148_v38  ;;  %v23_v44 = vadd.s32 16, %v2146_v37 }
   0x7   :  { %65 = vadd.xlane.f32.xlu0 %v64_v3  ;;  %1894 = vmatprep.subr.bf16.mxu1 %v1893_v19  ;;  %v24_v45 = vadd.s32 24, %v2146_v37  ;;  %v194_v52 = vunpack.c.l.s4 %v2073_v51  ;;  %v2162_v60 = vsub.s32 0, %v2146_v37 }
   0x8   :  { %vm28_vm1 = vcmp.ge.s32.totalorder %v2146_v37, %v27_v40  ;;  %v33_v42 = vmul.u32 8, %v32_v41  ;;  %vm29_vm2 = vcmp.ge.s32.totalorder %v22_v39, %v27_v40  ;;  %vm30_vm8 = vcmp.ge.s32.totalorder %v23_v44, %v27_v40 }
   0x9   :  { %vm31_vm9 = vcmp.ge.s32.totalorder %v24_v45, %v27_v40  ;;  %v195_v53 = vunpack.c.0.s8 %v194_v52 }
   0xa   :  { %1896 = vmatpush3.bf16.msra.mxu1 %v1893_v19  ;;  %vm34_vm3 = vcmp.lt.s32.totalorder %v2146_v37, %v33_v42  ;;  %vm35_vm4 = vcmp.lt.s32.totalorder %v22_v39, %v33_v42  ;;  %vm36_vm10 = vcmp.lt.s32.totalorder %v23_v44, %v33_v42  ;;  %vm37_vm11 = vcmp.lt.s32.totalorder %v24_v45, %v33_v42 }
   0xb   :  { %vm38_vm5 = vmand %vm28_vm1, %vm34_vm3  ;;  %v198_v54 = vsub.s32 %v195_v53, %v2146_v37  ;;  %vm956_vm3 = vcmask 1043456  }
   0xc   :  { %vm39_vm6 = vmand %vm29_vm2, %vm35_vm4  ;;  %vm603_vm4 = vcmask 31744  }
   0xd   :  { %vm1897_vm7 = vmpackc.low %vm39_vm6, %vm38_vm5  ;;  %vm1259_vm5 = vcmask 1041409   ;;  %vm1261_vm6 = vcmask 1042434  }
   0xe   :  { %1898 = vmatprep.subr.msk.bf16.mxu1 %vm1897_vm7, %v2070_v43  ;;  %vm40_vm12 = vmand %vm30_vm8, %vm36_vm10  ;;  %vm1265_vm8 = vcmask 1044484   ;;  %vm1269_vm10 = vcmask 1046534  }
   0xf   :  { %vm41_vm13 = vmand %vm31_vm9, %vm37_vm11  ;;  %vm1267_vm9 = vcmask 1045509   ;;  %vm1271_vm11 = vcmask 1047559  }
  0x10   :  { %vm1901_vm14 = vmpackc.low %vm41_vm13, %vm40_vm12 }
  0x90   :  { %v63_v4 = vpop.xlane.xlu0 %62 }
  0x91   :  { %v68_v5 = vmul.f32 0.03125, %v63_v4 }
  0x93   :  { %v70_v6 = vsub.f32 %v18_v0, %v68_v5 }
  0x94   :  { %v66_v7 = vpop.xlane.xlu0 %65 }
  0x95   :  { %v69_v8 = vmul.f32 0.03125, %v66_v7  ;;  %v72_v9 = vmul.f32 %v70_v6, %v70_v6 }
  0x97   :  { %v71_v10 = vsub.f32 %v19_v1, %v69_v8  ;;  %v74_v11 = vsel %vm60_vm0, %v72_v9, 0.0 }
  0x98   :  { %75 = vadd.xlane.f32.xlu1 %v74_v11 }
  0x99   :  { %v73_v12 = vmul.f32 %v71_v10, %v71_v10 }
  0x9b   :  { %v77_v13 = vsel %vm60_vm0, %v73_v12, 0.0 }
  0x9c   :  { %78 = vadd.xlane.f32.xlu1 %v77_v13 }
 0x125   :  { %v76_v20 = vpop.xlane.xlu1 %75 }
 0x126   :  { %v80_v21 = vmul.f32 0.03125, %v76_v20 }
 0x128   :  { %v82_v22 = vadd.f32 1e-05, %v80_v21 }
 0x129   :  { %v79_v23 = vpop.xlane.xlu1 %78 }
 0x12a   :  { %1972 = vrsqrt.f32 %v82_v22  ;;  %v81_v24 = vmul.f32 0.03125, %v79_v23 }
 0x12c   :  { %v83_v25 = vadd.f32 1e-05, %v81_v24 }
 0x12e   :  { %1974 = vrsqrt.f32 %v83_v25 }
 0x134   :  { %v1973_v26 = vpop.eup %1972 }
 0x135   :  { %v86_v28 = vmul.f32 %v1973_v26, %v70_v6 }
 0x137   :  { %v92_v30 = vmul.f32 %v1639_v27, %v86_v28 }
 0x138   :  { %v1975_v31 = vpop.eup %1974 }
 0x139   :  { %v87_v32 = vmul.f32 %v1975_v31, %v71_v10  ;;  %v98_v33 = vadd.f32 %v1640_v29, %v92_v30 }
 0x13b   :  { %v93_v34 = vmul.f32 %v1639_v27, %v87_v32  ;;  %1771 = vmatprep.mubr.msk.f32.mxu1 %vm60_vm0, %v98_v33 }
 0x13d   :  { %v99_v35 = vadd.f32 %v1640_v29, %v93_v34 }
 0x13f   :  { %1772 = vmatmul.mubr.msk.f32.vlgmr.msra.gmra.mrb[0].mxu1 %vm60_vm0, %v99_v35 }
 0x140   :  { %1900 = vmatpush3.bf16.msk.msra.mxu1 %vm1897_vm7, %v2070_v43  ;;  %vm1263_vm7 = vcmask 1043459  }
 0x141   :  { %1902 = vmatprep.subr.msk.bf16.mxu1 %vm1901_vm14, %v2070_v43 }
 0x144   :  { %1904 = vmatpush3.bf16.msk.msra.mxu1 %vm1901_vm14, %v2070_v43 }
 0x212   :  { %v1773_v47 = vpop.f32.mrb[0].mxu1 }
 0x213   :  { %v187_v48 = vadd.f32 %v1773_v47, %v1641_v46  ;;  %v181_v49 = vpop.f32.mrb[1].mxu1 }
 0x214   :  { %v182_v50 = vadd.f32 %v1641_v46, %v181_v49 }
 0x215   :  { %372 = vrot.lane.b32.xlu1 %v187_v48, %s2071_s7  ;;  %v248_v9 = vrot.slane %v187_v48, %v198_v54  ;;  %v241_v20 = vcombine.high %v187_v48, %v187_v48 }
 0x216   :  { %370 = vrot.lane.b32.xlu0 %v182_v50, %s2071_s7  ;;  %v199_v55 = vrot.slane %v182_v50, %v198_v54  ;;  %v192_v57 = vcombine.high %v182_v50, %v182_v50 }
 0x217   :  { %v256_v21 = vcombine.high %v248_v9, %v248_v9  ;;  %v264_v24 = vrot.slane %v248_v9, %v198_v54  ;;  %v255_v28 = vrot.slane %v241_v20, %v198_v54 }
 0x218   :  { %v207_v56 = vcombine.high %v199_v55, %v199_v55  ;;  %v215_v58 = vrot.slane %v199_v55, %v198_v54  ;;  %v206_v61 = vrot.slane %v192_v57, %v198_v54 }
 0x219   :  { %1105 = vrot.lane.b32.xlu1 %v182_v50, %s2072_s8  ;;  %v278_v31 = vrot.slane %v256_v21, %v198_v54  ;;  %v325_v32 = vrot.slane %v264_v24, %v2162_v60  ;;  %v286_v33 = vcombine.high %v264_v24, %v264_v24  ;;  %v257_v36 = vcombine.high %v255_v28, %v255_v28 }
 0x21a   :  { %v229_v59 = vrot.slane %v207_v56, %v198_v54  ;;  %v237_v62 = vcombine.high %v215_v58, %v215_v58  ;;  %v293_v63 = vrot.slane %v215_v58, %v2162_v60  ;;  %v208_v1 = vcombine.high %v206_v61, %v206_v61 }
 0x21b   :  { %v222_v7 = vrot.slane %v206_v61, %v198_v54  ;;  %v329_v39 = vrot.slane %v278_v31, %v2162_v60  ;;  %v288_v40 = vcombine.high %v278_v31, %v278_v31  ;;  %v333_v41 = vrot.slane %v286_v33, %v2162_v60 }
 0x21c   :  { %v297_v0 = vrot.slane %v229_v59, %v2162_v60  ;;  %v239_v3 = vcombine.high %v229_v59, %v229_v59  ;;  %v301_v6 = vrot.slane %v237_v62, %v2162_v60  ;;  %v236_v11 = vrot.slane %v208_v1, %v198_v54 }
 0x21d   :  { %1107 = vrot.lane.b32.xlu1 %v187_v48, %s2072_s8  ;;  %v309_v12 = vrot.slane %v222_v7, %v2162_v60  ;;  %v238_v13 = vcombine.high %v222_v7, %v222_v7  ;;  %v271_v42 = vrot.slane %v255_v28, %v198_v54  ;;  %v337_v45 = vrot.slane %v288_v40, %v2162_v60 }
 0x21e   :  { %v305_v10 = vrot.slane %v239_v3, %v2162_v60  ;;  %v313_v22 = vrot.slane %v236_v11, %v2162_v60  ;;  %v240_v23 = vcombine.high %v236_v11, %v236_v11  ;;  %v285_v46 = vrot.slane %v257_v36, %v198_v54 }
 0x21f   :  { %v317_v25 = vrot.slane %v238_v13, %v2162_v60  ;;  %v341_v47 = vrot.slane %v271_v42, %v2162_v60  ;;  %v287_v48 = vcombine.high %v271_v42, %v271_v42  ;;  %v52_v58 = vadd.s32 1, %v2146_v37 }
 0x220   :  { %v321_v30 = vrot.slane %v240_v23, %v2162_v60  ;;  %v345_v51 = vrot.slane %v285_v46, %v2162_v60  ;;  %v289_v52 = vcombine.high %v285_v46, %v285_v46  ;;  %v50_v59 = vmul.u32 8, %v2146_v37  ;;  %v585_v37 = vld [vmem:[%s2580_s1 + $0x8] sm:$0xff] }
 0x221   :  { %v349_v53 = vrot.slane %v287_v48, %v2162_v60  ;;  %v53_v61 = vmul.u32 8, %v52_v58  ;;  %v2074_v62 = vmov 0.0  }
 0x222   :  { %v353_v54 = vrot.slane %v289_v52, %v2162_v60  ;;  %vm51_vm15 = vcmp.ge.s32.totalorder %v2148_v38, %v50_v59  ;;  %v1962_v60 = vpack.i.bf16 %v2122_v15, %v2117_v14 }
 0x223   :  { %vm54_vm1 = vcmp.lt.s32.totalorder %v2148_v38, %v53_v61 }
 0x224   :  { %vm55_vm2 = vmand %vm51_vm15, %vm54_vm1  ;;  %1963 = vrot.lane.b32.xlu0 %v1962_v60, %s2075_s9 }
 0x287   :  { %v373_v29 = vpop.permute.xlu1 %372 }
 0x288   :  { %v371_v2 = vpop.permute.xlu0 %370  ;;  %v384_v35 = vmul.f32 %v373_v29, %v325_v32  ;;  %v385_v43 = vmul.f32 %v373_v29, %v329_v39  ;;  %v386_v44 = vmul.f32 %v373_v29, %v333_v41  ;;  %v387_v49 = vmul.f32 %v373_v29, %v337_v45 }
 0x289   :  { %v376_v4 = vmul.f32 %v371_v2, %v293_v63  ;;  %v377_v5 = vmul.f32 %v371_v2, %v297_v0  ;;  %v378_v8 = vmul.f32 %v371_v2, %v301_v6  ;;  %v379_v17 = vmul.f32 %v371_v2, %v305_v10 }
 0x28a   :  { %v380_v19 = vmul.f32 %v371_v2, %v309_v12  ;;  %v381_v26 = vmul.f32 %v371_v2, %v313_v22  ;;  %v382_v27 = vmul.f32 %v371_v2, %v317_v25  ;;  %v383_v34 = vmul.f32 %v371_v2, %v321_v30 }
 0x28b   :  { %1782 = vmatprep.mubr.msk.f32.mxu1 %vm60_vm0, %v376_v4  ;;  %v388_v50 = vmul.f32 %v373_v29, %v341_v47  ;;  %v389_v55 = vmul.f32 %v373_v29, %v345_v51  ;;  %v390_v56 = vmul.f32 %v373_v29, %v349_v53  ;;  %v391_v57 = vmul.f32 %v373_v29, %v353_v54 }
 0x28c   :  { %1783 = vmatmul.mubr.msk.f32.vlgmr.msra.gmra.mrb[2].mxu1 %vm60_vm0, %v377_v5  ;;  %v1638_v63 = vsel %vm55_vm2, 1.0, %v2074_v62  ;;  %v1967_v0 = vpack.i.bf16 %v2134_v18, %v2127_v16 }
 0x28d   :  { %1785 = vmatprep.mubr.msk.f32.mxu1 %vm60_vm0, %v378_v8  ;;  %1806 = vmatprep.subr.msk.mxu0 %vm956_vm3, %v1638_v63 }
 0x28e   :  { %1807 = vmatpush3.msk.msra.mxu0 %vm956_vm3, %v1638_v63  ;;  %1968 = vrot.lane.b32.xlu1 %v1967_v0, %s2075_s9 }
 0x290   :  { %1786 = vmatmul.mubr.msk.f32.gmra.mrb[4].mxu1 %vm60_vm0, %v379_v17 }
 0x291   :  { %1788 = vmatprep.mubr.msk.f32.mxu1 %vm60_vm0, %v380_v19 }
 0x294   :  { %1789 = vmatmul.mubr.msk.f32.gmra.mrb[6].mxu1 %vm60_vm0, %v381_v26 }
 0x295   :  { %1791 = vmatprep.mubr.msk.f32.mxu1 %vm60_vm0, %v382_v27 }
 0x298   :  { %1792 = vmatmul.mubr.msk.f32.gmra.mrb[8].mxu1 %vm60_vm0, %v383_v34 }
 0x299   :  { %1794 = vmatprep.mubr.msk.f32.mxu1 %vm60_vm0, %v384_v35 }
 0x29c   :  { %1795 = vmatmul.mubr.msk.f32.gmra.mrb[10].mxu1 %vm60_vm0, %v385_v43 }
 0x29d   :  { %1797 = vmatprep.mubr.msk.f32.mxu1 %vm60_vm0, %v386_v44 }
 0x2a0   :  { %1798 = vmatmul.mubr.msk.f32.gmra.mrb[12].mxu1 %vm60_vm0, %v387_v49 }
 0x2a1   :  { %1800 = vmatprep.mubr.msk.f32.mxu1 %vm60_vm0, %v388_v50 }
 0x2a4   :  { %1801 = vmatmul.mubr.msk.f32.gmra.mrb[14].mxu1 %vm60_vm0, %v389_v55 }
 0x2a5   :  { %1803 = vmatprep.mubr.msk.f32.mxu1 %vm60_vm0, %v390_v56 }
 0x2a8   :  { %1804 = vmatmul.mubr.msk.f32.gmra.mrb[16].mxu1 %vm60_vm0, %v391_v57 }
 0x35f   :  { %v1784_v38 = vpop.f32.mrb[2].mxu1 }
 0x360   :  { %v588_v1 = vadd.f32 %v1784_v38, %v585_v37  ;;  %v506_v2 = vpop.f32.mrb[3].mxu1 }
 0x361   :  { %v587_v3 = vadd.f32 %v585_v37, %v506_v2 }
 0x362   :  { %v611_v4 = vsel %vm603_vm4, %v588_v1, -inf }
 0x363   :  { %v612_v5 = vrot.slane %v611_v4, 4  ;;  %v604_v14 = vsel %vm603_vm4, %v587_v3, -inf  ;;  %v1787_v15 = vpop.f32.mrb[4].mxu1 }
 0x364   :  { %v605_v6 = vrot.slane %v604_v14, 4  ;;  %v2209_v16 = vadd.f32 %v1787_v15, %v585_v37  ;;  %v516_v18 = vpop.f32.mrb[5].mxu1 }
 0x365   :  { %v613_v7 = vmax.f32 %v611_v4, %v612_v5  ;;  %v2211_v8 = vadd.f32 %v585_v37, %v516_v18 }
 0x366   :  { %v606_v9 = vmax.f32 %v604_v14, %v605_v6  ;;  %v625_v10 = vsel %vm603_vm4, %v2209_v16, -inf }
 0x367   :  { %v614_v11 = vrot.slane %v613_v7, 2  ;;  %v626_v12 = vrot.slane %v625_v10, 4  ;;  %v618_v13 = vsel %vm603_vm4, %v2211_v8, -inf  ;;  %v1790_v17 = vpop.f32.mrb[6].mxu1 }
 0x368   :  { %v607_v19 = vrot.slane %v606_v9, 2  ;;  %v619_v20 = vrot.slane %v618_v13, 4  ;;  %v2217_v21 = vadd.f32 %v1790_v17, %v585_v37  ;;  %v526_v22 = vpop.f32.mrb[7].mxu1 }
 0x369   :  { %v615_v23 = vmax.f32 %v613_v7, %v614_v11  ;;  %v627_v24 = vmax.f32 %v625_v10, %v626_v12  ;;  %v2219_v25 = vadd.f32 %v585_v37, %v526_v22 }
 0x36a   :  { %v608_v26 = vmax.f32 %v606_v9, %v607_v19  ;;  %v620_v27 = vmax.f32 %v618_v13, %v619_v20  ;;  %v639_v28 = vsel %vm603_vm4, %v2217_v21, -inf }
 0x36b   :  { %v616_v29 = vrot.slane %v615_v23, 1  ;;  %v628_v30 = vrot.slane %v627_v24, 2  ;;  %v640_v31 = vrot.slane %v639_v28, 4  ;;  %v632_v32 = vsel %vm603_vm4, %v2219_v25, -inf  ;;  %v1793_v33 = vpop.f32.mrb[8].mxu1 }
 0x36c   :  { %v609_v34 = vrot.slane %v608_v26, 1  ;;  %v621_v35 = vrot.slane %v620_v27, 2  ;;  %v633_v36 = vrot.slane %v632_v32, 4  ;;  %v2225_v39 = vadd.f32 %v1793_v33, %v585_v37  ;;  %v536_v40 = vpop.f32.mrb[9].mxu1 }
 0x36d   :  { %v617_v41 = vmax.f32 %v615_v23, %v616_v29  ;;  %v629_v42 = vmax.f32 %v627_v24, %v628_v30  ;;  %v641_v43 = vmax.f32 %v639_v28, %v640_v31  ;;  %v2227_v44 = vadd.f32 %v585_v37, %v536_v40 }
 0x36e   :  { %v610_v45 = vmax.f32 %v608_v26, %v609_v34  ;;  %v622_v46 = vmax.f32 %v620_v27, %v621_v35  ;;  %v634_v47 = vmax.f32 %v632_v32, %v633_v36  ;;  %v653_v48 = vsel %vm603_vm4, %v2225_v39, -inf }
 0x36f   :  { %v717_v49 = vsub.f32 %v588_v1, %v617_v41  ;;  %v630_v50 = vrot.slane %v629_v42, 1  ;;  %v642_v51 = vrot.slane %v641_v43, 2  ;;  %v654_v52 = vrot.slane %v653_v48, 4  ;;  %v1796_v53 = vpop.f32.mrb[10].mxu1  ;;  %v2236_v1 = vld [vmem:[%s2580_s1 + $0x10] sm:$0xff] }
 0x370   :  { %v716_v55 = vsub.f32 %v587_v3, %v610_v45  ;;  %v623_v56 = vrot.slane %v622_v46, 1  ;;  %v635_v54 = vrot.slane %v634_v47, 2  ;;  %v646_v57 = vsel %vm603_vm4, %v2227_v44, -inf  ;;  %v546_v58 = vpop.f32.mrb[11].mxu1 }
 0x371   :  { %v734_v59 = vmul.f32 1.442695, %v717_v49  ;;  %v631_v61 = vmax.f32 %v629_v42, %v630_v50  ;;  %v643_v62 = vmax.f32 %v641_v43, %v642_v51  ;;  %v655_v63 = vmax.f32 %v653_v48, %v654_v52 }
 0x372   :  { %v732_v60 = vmul.f32 1.442695, %v716_v55  ;;  %v624_v0 = vmax.f32 %v622_v46, %v623_v56  ;;  %v636_v37 = vmax.f32 %v634_v47, %v635_v54  ;;  %v647_v38 = vrot.slane %v646_v57, 4 }
 0x373   :  { %1976 = vpow2.f32 %v734_v59  ;;  %v719_v2 = vsub.f32 %v2209_v16, %v631_v61  ;;  %v644_v3 = vrot.slane %v643_v62, 1  ;;  %v656_v4 = vrot.slane %v655_v63, 2  ;;  %v1799_v5 = vpop.f32.mrb[12].mxu1 }
 0x374   :  { %1978 = vpow2.f32 %v732_v60  ;;  %v718_v14 = vsub.f32 %v2211_v8, %v624_v0  ;;  %v637_v15 = vrot.slane %v636_v37, 1  ;;  %v648_v6 = vmax.f32 %v646_v57, %v647_v38  ;;  %v556_v18 = vpop.f32.mrb[13].mxu1 }
 0x375   :  { %v738_v7 = vmul.f32 1.442695, %v719_v2  ;;  %v645_v9 = vmax.f32 %v643_v62, %v644_v3  ;;  %v657_v10 = vmax.f32 %v655_v63, %v656_v4  ;;  %v2241_v11 = vadd.f32 %v1796_v53, %v2236_v1 }
 0x376   :  { %v736_v12 = vmul.f32 1.442695, %v718_v14  ;;  %v638_v13 = vmax.f32 %v636_v37, %v637_v15  ;;  %v649_v17 = vrot.slane %v648_v6, 2  ;;  %v2244_v16 = vadd.f32 %v2236_v1, %v546_v58 }
 0x377   :  { %1980 = vpow2.f32 %v738_v7  ;;  %v721_v19 = vsub.f32 %v2217_v21, %v645_v9  ;;  %v658_v20 = vrot.slane %v657_v10, 1  ;;  %v667_v8 = vsel %vm603_vm4, %v2241_v11, -inf  ;;  %v1802_v22 = vpop.f32.mrb[14].mxu1 }
 0x378   :  { %1982 = vpow2.f32 %v736_v12  ;;  %v720_v23 = vsub.f32 %v2219_v25, %v638_v13  ;;  %v650_v24 = vmax.f32 %v648_v6, %v649_v17  ;;  %v668_v26 = vrot.slane %v667_v8, 4  ;;  %v2250_v27 = vpop.f32.mrb[15].mxu1 }
 0x379   :  { %v742_v28 = vmul.f32 1.442695, %v721_v19  ;;  %v659_v29 = vmax.f32 %v657_v10, %v658_v20  ;;  %v660_v30 = vsel %vm603_vm4, %v2244_v16, -inf  ;;  %v2255_v31 = vadd.f32 %v1799_v5, %v2236_v1 }
 0x37a   :  { %v740_v21 = vmul.f32 1.442695, %v720_v23  ;;  %v651_v32 = vrot.slane %v650_v24, 1  ;;  %v669_v33 = vmax.f32 %v667_v8, %v668_v26  ;;  %v661_v34 = vrot.slane %v660_v30, 4 }
 0x37b   :  { %1984 = vpow2.f32 %v742_v28  ;;  %v723_v35 = vsub.f32 %v2225_v39, %v659_v29  ;;  %v681_v25 = vsel %vm603_vm4, %v2255_v31, -inf  ;;  %v2261_v36 = vadd.f32 %v2236_v1, %v556_v18  ;;  %v2263_v40 = vpop.f32.mrb[16].mxu1 }
 0x37c   :  { %1986 = vpow2.f32 %v740_v21  ;;  %v652_v41 = vmax.f32 %v650_v24, %v651_v32  ;;  %v670_v42 = vrot.slane %v669_v33, 2  ;;  %v662_v43 = vmax.f32 %v660_v30, %v661_v34  ;;  %v2265_v45 = vpop.f32.mrb[17].mxu1 }
 0x37d   :  { %v2267_v46 = vpop.eup %1976  ;;  %v746_v47 = vmul.f32 1.442695, %v723_v35  ;;  %v682_v48 = vrot.slane %v681_v25, 4  ;;  %v674_v39 = vsel %vm603_vm4, %v2261_v36, -inf  ;;  %v2287_v4 = vadd.f32 %v1802_v22, %v2236_v1 }
 0x37e   :  { %v2271_v49 = vpop.eup %1978  ;;  %v771_v50 = vsel %vm603_vm4, %v2267_v46, 0.0  ;;  %v722_v51 = vsub.f32 %v2227_v44, %v652_v41  ;;  %v671_v52 = vmax.f32 %v669_v33, %v670_v42  ;;  %v663_v53 = vrot.slane %v662_v43, 2 }
 0x37f   :  { %v772_v55 = vrot.slane %v771_v50, 4  ;;  %1988 = vpow2.f32 %v746_v47  ;;  %v683_v56 = vmax.f32 %v681_v25, %v682_v48  ;;  %v764_v62 = vsel %vm603_vm4, %v2271_v49, 0.0 }
 0x380   :  { %v744_v54 = vmul.f32 1.442695, %v722_v51  ;;  %v672_v57 = vrot.slane %v671_v52, 1  ;;  %v664_v58 = vmax.f32 %v662_v43, %v663_v53  ;;  %v675_v60 = vrot.slane %v674_v39, 4 }
 0x381   :  { %v2276_v59 = vpop.eup %1980  ;;  %v773_v61 = vadd.f32 %v772_v55, %v771_v50  ;;  %v684_v63 = vrot.slane %v683_v56, 2  ;;  %v765_v5 = vrot.slane %v764_v62, 4  ;;  %v695_v24 = vsel %vm603_vm4, %v2287_v4, -inf }
 0x382   :  { %v2280_v0 = vpop.eup %1982  ;;  %v785_v44 = vsel %vm603_vm4, %v2276_v59, 0.0  ;;  %1990 = vpow2.f32 %v744_v54  ;;  %v673_v37 = vmax.f32 %v671_v52, %v672_v57  ;;  %v665_v3 = vrot.slane %v664_v58, 1 }
 0x383   :  { %v786_v38 = vrot.slane %v785_v44, 4  ;;  %v778_v2 = vsel %vm603_vm4, %v2280_v0, 0.0  ;;  %v685_v6 = vmax.f32 %v683_v56, %v684_v63  ;;  %v774_v7 = vrot.slane %v773_v61, 2 }
 0x384   :  { %v779_v14 = vrot.slane %v778_v2, 4  ;;  %v725_v15 = vsub.f32 %v2241_v11, %v673_v37  ;;  %v666_v10 = vmax.f32 %v664_v58, %v665_v3  ;;  %v676_v12 = vmax.f32 %v674_v39, %v675_v60 }
 0x385   :  { %v2290_v18 = vpop.eup %1984  ;;  %v787_v9 = vadd.f32 %v786_v38, %v785_v44  ;;  %v686_v8 = vrot.slane %v685_v6, 1  ;;  %v2303_v21 = vadd.f32 %v774_v7, %v773_v61  ;;  %v696_v42 = vrot.slane %v695_v24, 4 }
 0x386   :  { %v2292_v13 = vpop.eup %1986  ;;  %v780_v17 = vadd.f32 %v779_v14, %v778_v2  ;;  %v799_v19 = vsel %vm603_vm4, %v2290_v18, 0.0  ;;  %v750_v20 = vmul.f32 1.442695, %v725_v15  ;;  %v724_v29 = vsub.f32 %v2244_v16, %v666_v10 }
 0x387   :  { %v788_v22 = vrot.slane %v787_v9, 2  ;;  %v800_v23 = vrot.slane %v799_v19, 4  ;;  %v792_v11 = vsel %vm603_vm4, %v2292_v13, 0.0  ;;  %v687_v33 = vmax.f32 %v685_v6, %v686_v8 }
 0x388   :  { %v781_v26 = vrot.slane %v780_v17, 2  ;;  %v793_v28 = vrot.slane %v792_v11, 4  ;;  %1992 = vpow2.f32 %v750_v20  ;;  %v677_v34 = vrot.slane %v676_v12, 2 }
 0x389   :  { %v2301_v30 = vpop.eup %1988  ;;  %v801_v32 = vadd.f32 %v800_v23, %v799_v19  ;;  %v748_v41 = vmul.f32 1.442695, %v724_v29  ;;  %v2307_v43 = vadd.f32 %v788_v22, %v787_v9  ;;  %v727_v39 = vsub.f32 %v2255_v31, %v687_v33 }
 0x38a   :  { %v794_v35 = vadd.f32 %v793_v28, %v792_v11  ;;  %v813_v25 = vsel %vm603_vm4, %v2301_v30, 0.0  ;;  %v2312_v50 = vadd.f32 %v781_v26, %v780_v17  ;;  %v678_v51 = vmax.f32 %v676_v12, %v677_v34 }
 0x38b   :  { %v802_v47 = vrot.slane %v801_v32, 2  ;;  %v814_v48 = vrot.slane %v813_v25, 4  ;;  %1994 = vpow2.f32 %v748_v41  ;;  %v766_v52 = vadd.f32 %v765_v5, %v764_v62 }
 0x38c   :  { %v2310_v16 = vpop.eup %1990  ;;  %v795_v53 = vrot.slane %v794_v35, 2  ;;  %v754_v56 = vmul.f32 1.442695, %v727_v39  ;;  %v776_v54 = vrot.slane %v2303_v21, 1  ;;  %v679_v58 = vrot.slane %v678_v51, 1 }
 0x38d   :  { %v806_v55 = vsel %vm603_vm4, %v2310_v16, 0.0  ;;  %v815_v57 = vadd.f32 %v814_v48, %v813_v25  ;;  %v697_v61 = vmax.f32 %v695_v24, %v696_v42  ;;  %v790_v63 = vrot.slane %v2307_v43, 1 }
 0x38e   :  { %v2318_v31 = vadd.f32 %v802_v47, %v801_v32  ;;  %1996 = vpow2.f32 %v754_v56  ;;  %v2322_v60 = vadd.f32 %v2236_v1, %v2250_v27  ;;  %v783_v62 = vrot.slane %v2312_v50, 1 }
 0x38f   :  { %v807_v44 = vrot.slane %v806_v55, 4  ;;  %v680_v37 = vmax.f32 %v678_v51, %v679_v58  ;;  %v698_v38 = vrot.slane %v697_v61, 2  ;;  %v2325_v2 = vadd.f32 %v795_v53, %v794_v35 }
 0x390   :  { %v688_v3 = vsel %vm603_vm4, %v2322_v60, -inf  ;;  %v2331_v5 = vadd.f32 %v2263_v40, %v2236_v1  ;;  %v2335_v14 = vadd.f32 %v2236_v1, %v2265_v45  ;;  %v816_v15 = vrot.slane %v815_v57, 2 }
 0x391   :  { %v726_v6 = vsub.f32 %v2261_v36, %v680_v37  ;;  %v699_v7 = vmax.f32 %v697_v61, %v698_v38  ;;  %v689_v9 = vrot.slane %v688_v3, 4  ;;  %v804_v10 = vrot.slane %v2318_v31, 1 }
 0x392   :  { %v2337_v27 = vpop.eup %1992  ;;  %v709_v40 = vsel %vm603_vm4, %v2331_v5, -inf  ;;  %v702_v17 = vsel %vm603_vm4, %v2335_v14, -inf  ;;  %v808_v1 = vadd.f32 %v807_v44, %v806_v55  ;;  %v767_v23 = vrot.slane %v766_v52, 2 }
 0x393   :  { %v827_v12 = vsel %vm603_vm4, %v2337_v27, 0.0  ;;  %v752_v19 = vmul.f32 1.442695, %v726_v6  ;;  %v700_v20 = vrot.slane %v699_v7, 1  ;;  %v690_v8 = vmax.f32 %v688_v3, %v689_v9 }
 0x394   :  { %v828_v45 = vrot.slane %v827_v12, 4  ;;  %v710_v22 = vrot.slane %v709_v40, 4  ;;  %v703_v36 = vrot.slane %v702_v17, 4  ;;  %v797_v24 = vrot.slane %v2325_v2, 1 }
 0x395   :  { %v2347_v11 = vpop.eup %1994  ;;  %v2350_v26 = vadd.f32 %v816_v15, %v815_v57  ;;  %1998 = vpow2.f32 %v752_v19  ;;  %v701_v28 = vmax.f32 %v699_v7, %v700_v20  ;;  %v691_v32 = vrot.slane %v690_v8, 2 }
 0x396   :  { %v820_v29 = vsel %vm603_vm4, %v2347_v11, 0.0  ;;  %v711_v33 = vmax.f32 %v709_v40, %v710_v22  ;;  %v704_v34 = vmax.f32 %v702_v17, %v703_v36  ;;  %v809_v35 = vrot.slane %v808_v1, 2 }
 0x397   :  { %v821_v25 = vrot.slane %v820_v29, 4  ;;  %v729_v41 = vsub.f32 %v2287_v4, %v701_v28  ;;  %v768_v42 = vadd.f32 %v767_v23, %v766_v52  ;;  %v829_v48 = vadd.f32 %v828_v45, %v827_v12 }
 0x398   :  { %v2355_v47 = vpop.eup %1996  ;;  %v692_v39 = vmax.f32 %v690_v8, %v691_v32  ;;  %v712_v51 = vrot.slane %v711_v33, 2  ;;  %v705_v53 = vrot.slane %v704_v34, 2  ;;  %v777_v58 = vadd.f32 %v776_v54, %v2303_v21 }
 0x399   :  { %v822_v55 = vadd.f32 %v821_v25, %v820_v29  ;;  %v841_v56 = vsel %vm603_vm4, %v2355_v47, 0.0  ;;  %v758_v57 = vmul.f32 1.442695, %v729_v41  ;;  %v810_v3 = vadd.f32 %v809_v35, %v808_v1 }
 0x39a   :  { %v842_v61 = vrot.slane %v841_v56, 4  ;;  %v693_v44 = vrot.slane %v692_v39, 1  ;;  %v713_v37 = vmax.f32 %v711_v33, %v712_v51  ;;  %v706_v38 = vmax.f32 %v704_v34, %v705_v53 }
 0x39b   :  { %v823_v4 = vrot.slane %v822_v55, 2  ;;  %2000 = vpow2.f32 %v758_v57  ;;  %v769_v52 = vrot.slane %v768_v42, 1  ;;  %v830_v15 = vrot.slane %v829_v48, 2 }
 0x39c   :  { %v694_v6 = vmax.f32 %v692_v39, %v693_v44  ;;  %v714_v7 = vrot.slane %v713_v37, 1  ;;  %v707_v9 = vrot.slane %v706_v38, 1  ;;  %v843_v40 = vadd.f32 %v842_v61, %v841_v56 }
 0x39d   :  { %v824_v12 = vadd.f32 %v823_v4, %v822_v55  ;;  %v770_v17 = vadd.f32 %v769_v52, %v768_v42  ;;  %v784_v45 = vadd.f32 %v783_v62, %v2312_v50  ;;  %2002 = vrcp.f32 %v777_v58 }
 0x39e   :  { %v728_v19 = vsub.f32 %v2322_v60, %v694_v6  ;;  %v715_v21 = vmax.f32 %v713_v37, %v714_v7  ;;  %v708_v54 = vmax.f32 %v706_v38, %v707_v9  ;;  %v818_v1 = vrot.slane %v2350_v26, 1 }
 0x39f   :  { %v2362_v20 = vpop.eup %1998  ;;  %v811_v8 = vrot.slane %v810_v3, 1  ;;  %2004 = vrcp.f32 %v770_v17  ;;  %v791_v22 = vadd.f32 %v790_v63, %v2307_v43  ;;  %v831_v36 = vadd.f32 %v830_v15, %v829_v48 }
 0x3a0   :  { %v834_v23 = vsel %vm603_vm4, %v2362_v20, 0.0  ;;  %v756_v50 = vmul.f32 1.442695, %v728_v19  ;;  %v731_v60 = vsub.f32 %v2331_v5, %v715_v21  ;;  %v844_v62 = vrot.slane %v843_v40, 2 }
 0x3a1   :  { %v835_v28 = vrot.slane %v834_v23, 4  ;;  %v730_v29 = vsub.f32 %v2335_v14, %v708_v54  ;;  %2006 = vrcp.f32 %v784_v45  ;;  %v825_v32 = vrot.slane %v824_v12, 1 }
 0x3a2   :  { %2008 = vpow2.f32 %v756_v50  ;;  %v762_v33 = vmul.f32 1.442695, %v731_v60  ;;  %v798_v34 = vadd.f32 %v797_v24, %v2325_v2  ;;  %v805_v43 = vadd.f32 %v804_v10, %v2318_v31 }
 0x3a3   :  { %v836_v35 = vadd.f32 %v835_v28, %v834_v23  ;;  %v760_v25 = vmul.f32 1.442695, %v730_v29  ;;  %2010 = vrcp.f32 %v791_v22  ;;  %v812_v63 = vadd.f32 %v811_v8, %v810_v3 }
 0x3a4   :  { %2012 = vpow2.f32 %v762_v33  ;;  %v832_v41 = vrot.slane %v831_v36, 1  ;;  %v819_v14 = vadd.f32 %v818_v1, %v2350_v26  ;;  %v845_v48 = vadd.f32 %v844_v62, %v843_v40 }
 0x3a5   :  { %v2376_v5 = vpop.eup %2000  ;;  %v837_v42 = vrot.slane %v836_v35, 2  ;;  %2014 = vpow2.f32 %v760_v25  ;;  %v826_v24 = vadd.f32 %v825_v32, %v824_v12 }
 0x3a6   :  { %v855_v2 = vsel %vm603_vm4, %v2376_v5, 0.0  ;;  %2016 = vrcp.f32 %v798_v34  ;;  %v846_v56 = vrot.slane %v845_v48, 1  ;;  %v833_v26 = vadd.f32 %v832_v41, %v831_v36 }
 0x3a7   :  { %v838_v39 = vadd.f32 %v837_v42, %v836_v35  ;;  %v856_v51 = vrot.slane %v855_v2, 4  ;;  %2018 = vrcp.f32 %v805_v43  ;;  %v2003_v53 = vpop.eup %2002 }
 0x3a8   :  { %2020 = vrcp.f32 %v812_v63  ;;  %v893_v44 = vmul.f32 %v2003_v53, %v2267_v46  ;;  %v847_v46 = vadd.f32 %v846_v56, %v845_v48 }
 0x3a9   :  { %v2005_v31 = vpop.eup %2004  ;;  %v839_v10 = vrot.slane %v838_v39, 1  ;;  %v857_v55 = vadd.f32 %v856_v51, %v855_v2  ;;  %2022 = vrcp.f32 %v819_v14 }
 0x3aa   :  { %v892_v57 = vmul.f32 %v2005_v31, %v2271_v49  ;;  %2024 = vrcp.f32 %v826_v24 }
 0x3ab   :  { %v2007_v58 = vpop.eup %2006  ;;  %v858_v61 = vrot.slane %v857_v55, 2  ;;  %v840_v37 = vadd.f32 %v839_v10, %v838_v39 }
 0x3ac   :  { %v2383_v38 = vpop.eup %2008  ;;  %1808 = vmatprep.mubr.msk.f32.mxu0 %vm603_vm4, %v892_v57  ;;  %v894_v3 = vmul.f32 %v2007_v58, %v2280_v0  ;;  %v1106_v58 = vpop.permute.xlu1 %1105 }
 0x3ad   :  { %v2011_v4 = vpop.eup %2010  ;;  %v859_v52 = vadd.f32 %v858_v61, %v857_v55  ;;  %v848_v15 = vsel %vm603_vm4, %v2383_v38, 0.0  ;;  %1809 = vmatmul.mubr.msk.f32.vlgmr.msra.gmra.mrb[0].mxu0 %vm603_vm4, %v893_v44  ;;  %2026 = vrcp.f32 %v840_v37 }
 0x3ae   :  { %v2390_v49 = vpop.eup %2012  ;;  %v849_v6 = vrot.slane %v848_v15, 4  ;;  %1811 = vmatprep.mubr.msk.f32.mxu0 %vm603_vm4, %v894_v3  ;;  %2028 = vrcp.f32 %v833_v26  ;;  %v895_v0 = vmul.f32 %v2011_v4, %v2276_v59 }
 0x3af   :  { %v2015_v7 = vpop.eup %2014  ;;  %v869_v9 = vsel %vm603_vm4, %v2390_v49, 0.0  ;;  %v860_v21 = vrot.slane %v859_v52, 1  ;;  %2030 = vrcp.f32 %v847_v46 }
 0x3b0   :  { %v2017_v12 = vpop.eup %2016  ;;  %v850_v40 = vadd.f32 %v849_v6, %v848_v15  ;;  %v870_v17 = vrot.slane %v869_v9, 4  ;;  %v862_v45 = vsel %vm603_vm4, %v2015_v7, 0.0 }
 0x3b1   :  { %v2019_v19 = vpop.eup %2018  ;;  %v863_v54 = vrot.slane %v862_v45, 4  ;;  %1812 = vmatmul.mubr.msk.f32.gmra.mrb[2].mxu0 %vm603_vm4, %v895_v0  ;;  %v896_v1 = vmul.f32 %v2017_v12, %v2292_v13  ;;  %v861_v33 = vadd.f32 %v860_v21, %v859_v52 }
 0x3b2   :  { %v2021_v8 = vpop.eup %2020  ;;  %v851_v22 = vrot.slane %v850_v40, 2  ;;  %v871_v36 = vadd.f32 %v870_v17, %v869_v9  ;;  %v897_v59 = vmul.f32 %v2019_v19, %v2290_v18 }
 0x3b3   :  { %v2023_v23 = vpop.eup %2022  ;;  %v864_v50 = vadd.f32 %v863_v54, %v862_v45  ;;  %1814 = vmatprep.mubr.msk.f32.mxu0 %vm603_vm4, %v896_v1  ;;  %v898_v60 = vmul.f32 %v2021_v8, %v2310_v16  ;;  %2032 = vrcp.f32 %v861_v33 }
 0x3b4   :  { %v2025_v62 = vpop.eup %2024  ;;  %v852_v28 = vadd.f32 %v851_v22, %v850_v40  ;;  %v872_v29 = vrot.slane %v871_v36, 2  ;;  %v899_v63 = vmul.f32 %v2023_v23, %v2301_v30 }
 0x3b5   :  { %v865_v32 = vrot.slane %v864_v50, 2  ;;  %1815 = vmatmul.mubr.msk.f32.gmra.mrb[4].mxu0 %vm603_vm4, %v897_v59  ;;  %v900_v35 = vmul.f32 %v2025_v62, %v2347_v11 }
 0x3b6   :  { %v853_v13 = vrot.slane %v852_v28, 1  ;;  %v873_v34 = vadd.f32 %v872_v29, %v871_v36  ;;  %1817 = vmatprep.mubr.msk.f32.mxu0 %vm603_vm4, %v898_v60 }
 0x3b7   :  { %v2027_v25 = vpop.eup %2026  ;;  %v866_v43 = vadd.f32 %v865_v32, %v864_v50 }
 0x3b8   :  { %v2029_v18 = vpop.eup %2028  ;;  %v874_v41 = vrot.slane %v873_v34, 1  ;;  %v854_v16 = vadd.f32 %v853_v13, %v852_v28  ;;  %v902_v14 = vmul.f32 %v2027_v25, %v2362_v20 }
 0x3b9   :  { %v867_v42 = vrot.slane %v866_v43, 1  ;;  %1818 = vmatmul.mubr.msk.f32.gmra.mrb[6].mxu0 %vm603_vm4, %v899_v63  ;;  %v901_v2 = vmul.f32 %v2029_v18, %v2337_v27  ;;  %v2031_v24 = vpop.eup %2030 }
 0x3ba   :  { %1820 = vmatprep.mubr.msk.f32.mxu0 %vm603_vm4, %v900_v35  ;;  %2034 = vrcp.f32 %v854_v16  ;;  %v875_v48 = vadd.f32 %v874_v41, %v873_v34  ;;  %v903_v30 = vmul.f32 %v2031_v24, %v2355_v47  ;;  %v1964_v47 = vpop.permute.xlu0 %1963 }
 0x3bb   :  { %v868_v11 = vadd.f32 %v867_v42, %v866_v43  ;;  %v1966_v56 = vunpack.i.h.bf16 %v1964_v47  ;;  %v1965_v57 = vunpack.i.l.bf16 %v1964_v47 }
 0x3bc   :  { %2036 = vrcp.f32 %v875_v48 }
 0x3bd   :  { %1821 = vmatmul.mubr.msk.f32.gmra.mrb[8].mxu0 %vm603_vm4, %v901_v2  ;;  %2038 = vrcp.f32 %v868_v11  ;;  %v2033_v39 = vpop.eup %2032  ;;  %v1905_v26 = vpack.c.bf16 %v1966_v56, %v1965_v57 }
 0x3be   :  { %1823 = vmatprep.mubr.msk.f32.mxu0 %vm603_vm4, %v902_v14  ;;  %v905_v31 = vmul.f32 %v2033_v39, %v2376_v5  ;;  %v2421_v5 = vpop.permute.xlu1 %1107 }
 0x3bf   :  { %1906 = vmatprep.subr.bf16.mxu0 %v1905_v26 }
 0x3c0   :  { %1908 = vmatpush3.bf16.msra.mxu0 %v1905_v26 }
 0x3c1   :  { %1824 = vmatmul.mubr.msk.f32.gmra.mrb[10].mxu0 %vm603_vm4, %v903_v30 }
 0x3c2   :  { %v1969_v61 = vpop.permute.xlu1 %1968 }
 0x3c3   :  { %v1971_v44 = vunpack.i.h.bf16 %v1969_v61  ;;  %v1970_v37 = vunpack.i.l.bf16 %v1969_v61 }
 0x3c4   :  { %v2035_v51 = vpop.eup %2034 }
 0x3c5   :  { %v904_v20 = vmul.f32 %v2035_v51, %v2383_v38  ;;  %v1909_v38 = vpack.c.bf16 %v1971_v44, %v1970_v37 }
 0x3c6   :  { %v2037_v53 = vpop.eup %2036 }
 0x3c7   :  { %v2039_v27 = vpop.eup %2038  ;;  %1826 = vmatprep.mubr.msk.f32.mxu0 %vm603_vm4, %v904_v20  ;;  %v907_v55 = vmul.f32 %v2037_v53, %v2390_v49  ;;  %1910 = vmatprep.subr.bf16.mxu0 %v1909_v38 }
 0x3c8   :  { %1827 = vmatmul.mubr.msk.f32.gmra.mrb[12].mxu0 %vm603_vm4, %v905_v31  ;;  %v906_v10 = vmul.f32 %v2039_v27, %v2015_v7 }
 0x3c9   :  { %1912 = vmatpush3.bf16.msra.mxu0 %v1909_v38 }
 0x3ca   :  { %1829 = vmatprep.mubr.msk.f32.mxu0 %vm603_vm4, %v906_v10 }
 0x3cc   :  { %1830 = vmatmul.mubr.msk.f32.gmra.mrb[14].mxu0 %vm603_vm4, %v907_v55 }
 0x480   :  { %v1810_v3 = vpop.f32.mrb[0].mxu0 }
 0x481   :  { %v1112_v4 = vmul.f32 %v1810_v3, %v1106_v58  ;;  %v1026_v52 = vpop.f32.mrb[1].mxu0 }
 0x482   :  { %v1111_v15 = vmul.f32 %v1106_v58, %v1026_v52 }
 0x483   :  { %v1134_v49 = vsel %vm60_vm0, %v1112_v4, 0.0 }
 0x484   :  { %v1135_v6 = vrot.slane %v1134_v49, 4  ;;  %v1127_v46 = vsel %vm60_vm0, %v1111_v15, 0.0  ;;  %v1813_v7 = vpop.f32.mrb[2].mxu0 }
 0x485   :  { %v1128_v9 = vrot.slane %v1127_v46, 4  ;;  %v1114_v0 = vmul.f32 %v1813_v7, %v1106_v58  ;;  %v1036_v12 = vpop.f32.mrb[3].mxu0 }
 0x486   :  { %v1136_v40 = vadd.f32 %v1135_v6, %v1134_v49  ;;  %v1113_v17 = vmul.f32 %v1106_v58, %v1036_v12 }
 0x487   :  { %v1129_v45 = vadd.f32 %v1128_v9, %v1127_v46  ;;  %v1148_v19 = vsel %vm60_vm0, %v1114_v0, 0.0 }
 0x488   :  { %v1137_v21 = vrot.slane %v1136_v40, 2  ;;  %v1149_v54 = vrot.slane %v1148_v19, 4  ;;  %v1141_v1 = vsel %vm60_vm0, %v1113_v17, 0.0  ;;  %v1816_v8 = vpop.f32.mrb[4].mxu0 }
 0x489   :  { %v1130_v22 = vrot.slane %v1129_v45, 2  ;;  %v1142_v36 = vrot.slane %v1141_v1, 4  ;;  %v1116_v23 = vmul.f32 %v1816_v8, %v1106_v58  ;;  %v1046_v50 = vpop.f32.mrb[5].mxu0 }
 0x48a   :  { %v1138_v59 = vadd.f32 %v1137_v21, %v1136_v40  ;;  %v1150_v60 = vadd.f32 %v1149_v54, %v1148_v19  ;;  %v1115_v62 = vmul.f32 %v1106_v58, %v1046_v50 }
 0x48b   :  { %v1131_v28 = vadd.f32 %v1130_v22, %v1129_v45  ;;  %v1143_v29 = vadd.f32 %v1142_v36, %v1141_v1  ;;  %v1162_v32 = vsel %vm60_vm0, %v1116_v23, 0.0 }
 0x48c   :  { %v1139_v33 = vrot.slane %v1138_v59, 1  ;;  %v1151_v13 = vrot.slane %v1150_v60, 2  ;;  %v1163_v34 = vrot.slane %v1162_v32, 4  ;;  %v1155_v35 = vsel %vm60_vm0, %v1115_v62, 0.0  ;;  %v1819_v25 = vpop.f32.mrb[6].mxu0 }
 0x48d   :  { %v1132_v43 = vrot.slane %v1131_v28, 1  ;;  %v1144_v63 = vrot.slane %v1143_v29, 2  ;;  %v1156_v18 = vrot.slane %v1155_v35, 4  ;;  %v1118_v41 = vmul.f32 %v1819_v25, %v1106_v58  ;;  %v1056_v16 = vpop.f32.mrb[7].mxu0 }
 0x48e   :  { %v1140_v42 = vadd.f32 %v1139_v33, %v1138_v59  ;;  %v1152_v14 = vadd.f32 %v1151_v13, %v1150_v60  ;;  %v1164_v48 = vadd.f32 %v1163_v34, %v1162_v32  ;;  %v1117_v2 = vmul.f32 %v1106_v58, %v1056_v16 }
 0x48f   :  { %v1133_v11 = vadd.f32 %v1132_v43, %v1131_v28  ;;  %v1145_v24 = vadd.f32 %v1144_v63, %v1143_v29  ;;  %v1157_v30 = vadd.f32 %v1156_v18, %v1155_v35  ;;  %v1176_v39 = vsel %vm60_vm0, %v1118_v41, 0.0 }
 0x490   :  { %v1153_v51 = vrot.slane %v1152_v14, 1  ;;  %v1165_v20 = vrot.slane %v1164_v48, 2  ;;  %v1177_v53 = vrot.slane %v1176_v39, 4  ;;  %v1169_v31 = vsel %vm60_vm0, %v1117_v2, 0.0  ;;  %v1822_v27 = vpop.f32.mrb[8].mxu0 }
 0x491   :  { %v1260_v10 = vsel %vm1259_vm5, %v1140_v42, %v1133_v11  ;;  %v1146_v55 = vrot.slane %v1145_v24, 1  ;;  %v1158_v47 = vrot.slane %v1157_v30, 2  ;;  %v1170_v56 = vrot.slane %v1169_v31, 4  ;;  %v1066_v57 = vpop.f32.mrb[9].mxu0 }
 0x492   :  { %v1166_v26 = vadd.f32 %v1165_v20, %v1164_v48  ;;  %v1178_v61 = vadd.f32 %v1177_v53, %v1176_v39  ;;  %v1120_v58 = vmul.f32 %v1822_v27, %v2421_v5  ;;  %v1119_v3 = vmul.f32 %v2421_v5, %v1066_v57 }
 0x493   :  { %v1147_v44 = vadd.f32 %v1146_v55, %v1145_v24  ;;  %v1159_v37 = vadd.f32 %v1158_v47, %v1157_v30  ;;  %v1171_v38 = vadd.f32 %v1170_v56, %v1169_v31  ;;  %v1154_v4 = vadd.f32 %v1153_v51, %v1152_v14 }
 0x494   :  { %v1179_v52 = vrot.slane %v1178_v61, 2  ;;  %v1190_v15 = vsel %vm60_vm0, %v1120_v58, 0.0  ;;  %v1825_v49 = vpop.f32.mrb[10].mxu0  ;;  %v1167_v12 = vrot.slane %v1166_v26, 1  ;;  %v1183_v17 = vsel %vm60_vm0, %v1119_v3, 0.0 }
 0x495   :  { %v1262_v6 = vsel %vm1261_vm6, %v1147_v44, %v1260_v10  ;;  %v1160_v46 = vrot.slane %v1159_v37, 1  ;;  %v1172_v7 = vrot.slane %v1171_v38, 2  ;;  %v1191_v9 = vrot.slane %v1190_v15, 4  ;;  %v1076_v0 = vpop.f32.mrb[11].mxu0 }
 0x496   :  { %v1180_v40 = vadd.f32 %v1179_v52, %v1178_v61  ;;  %v1122_v45 = vmul.f32 %v1825_v49, %v2421_v5  ;;  %v1184_v1 = vrot.slane %v1183_v17, 4  ;;  %v1121_v22 = vmul.f32 %v2421_v5, %v1076_v0 }
 0x497   :  { %v1161_v19 = vadd.f32 %v1160_v46, %v1159_v37  ;;  %v1173_v21 = vadd.f32 %v1172_v7, %v1171_v38  ;;  %v1192_v54 = vadd.f32 %v1191_v9, %v1190_v15  ;;  %v1264_v36 = vsel %vm1263_vm7, %v1154_v4, %v1262_v6 }
 0x498   :  { %v1204_v8 = vsel %vm60_vm0, %v1122_v45, 0.0  ;;  %v1185_v59 = vadd.f32 %v1184_v1, %v1183_v17  ;;  %v1168_v62 = vadd.f32 %v1167_v12, %v1166_v26  ;;  %v1181_v28 = vrot.slane %v1180_v40, 1 }
 0x499   :  { %v1174_v23 = vrot.slane %v1173_v21, 1  ;;  %v1193_v50 = vrot.slane %v1192_v54, 2  ;;  %v1205_v60 = vrot.slane %v1204_v8, 4  ;;  %v1197_v29 = vsel %vm60_vm0, %v1121_v22, 0.0 }
 0x49a   :  { %v1266_v32 = vsel %vm1265_vm8, %v1161_v19, %v1264_v36  ;;  %v1186_v34 = vrot.slane %v1185_v59, 2  ;;  %v1198_v43 = vrot.slane %v1197_v29, 4  ;;  %v1182_v2 = vadd.f32 %v1181_v28, %v1180_v40 }
 0x49b   :  { %v1175_v33 = vadd.f32 %v1174_v23, %v1173_v21  ;;  %v1194_v13 = vadd.f32 %v1193_v50, %v1192_v54  ;;  %v1206_v35 = vadd.f32 %v1205_v60, %v1204_v8  ;;  %v1828_v25 = vpop.f32.mrb[12].mxu0  ;;  %v1268_v41 = vsel %vm1267_vm9, %v1168_v62, %v1266_v32 }
 0x49c   :  { %v1124_v63 = vmul.f32 %v1828_v25, %v2421_v5  ;;  %v1086_v18 = vpop.f32.mrb[13].mxu0  ;;  %v1187_v42 = vadd.f32 %v1186_v34, %v1185_v59  ;;  %v1199_v11 = vadd.f32 %v1198_v43, %v1197_v29  ;;  %v2044_v25 = vld [vmem:[%s2579_s0 + $0x8] sm:$0xff] }
 0x49d   :  { %v1195_v16 = vrot.slane %v1194_v13, 1  ;;  %v1207_v14 = vrot.slane %v1206_v35, 2  ;;  %v1123_v48 = vmul.f32 %v2421_v5, %v1086_v18  ;;  %v1270_v30 = vsel %vm1269_vm10, %v1175_v33, %v1268_v41  ;;  %v2045_v18 = vld [vmem:[%s2579_s0] sm:$0xff] }
 0x49e   :  { %v1218_v24 = vsel %vm60_vm0, %v1124_v63, 0.0  ;;  %v1188_v51 = vrot.slane %v1187_v42, 1  ;;  %v1200_v27 = vrot.slane %v1199_v11, 2  ;;  %v1272_v56 = vsel %vm1271_vm11, %v1182_v2, %v1270_v30 }
 0x49f   :  { %v1196_v39 = vadd.f32 %v1195_v16, %v1194_v13  ;;  %v1208_v20 = vadd.f32 %v1207_v14, %v1206_v35  ;;  %v1219_v53 = vrot.slane %v1218_v24, 4  ;;  %v1831_v31 = vpop.f32.mrb[14].mxu0  ;;  %v1211_v10 = vsel %vm60_vm0, %v1123_v48, 0.0  ;;  %1840 = vmatprep.mubr.msk.f32.mxu0 %vm60_vm0, %v1272_v56  ;;  %v1683_v35 = vld [vmem:[%s2580_s1 + $0x3] ss:$0 sm:$0xff]  ;;  %v1426_v56 = vld [vmem:[%s2581_s2 + $0x28] sm:$0xff] }
 0x4a0   :  { %v1126_v55 = vmul.f32 %v1831_v31, %v2421_v5  ;;  %v1096_v47 = vpop.f32.mrb[15].mxu0  ;;  %v1189_v57 = vadd.f32 %v1188_v51, %v1187_v42  ;;  %v1212_v61 = vrot.slane %v1211_v10, 4  ;;  %v1201_v58 = vadd.f32 %v1200_v27, %v1199_v11 }
 0x4a1   :  { %v1220_v26 = vadd.f32 %v1219_v53, %v1218_v24  ;;  %v1125_v37 = vmul.f32 %v2421_v5, %v1096_v47  ;;  %v1209_v3 = vrot.slane %v1208_v20, 1 }
 0x4a2   :  { %v1232_v44 = vsel %vm60_vm0, %v1126_v55, 0.0  ;;  %v1273_v38 = vsel %vm1259_vm5, %v1196_v39, %v1189_v57  ;;  %v1213_v52 = vadd.f32 %v1212_v61, %v1211_v10  ;;  %v1202_v15 = vrot.slane %v1201_v58, 1  ;;  %v1424_v10 = vld [vmem:[%s2581_s2 + $0x8] sm:$0xff]  ;;  %v1425_v55 = vld [vmem:[%s2581_s2 + $0x18] sm:$0xff]  ;;  %v1516_v61 = vld [vmem:[%s2582_s3] sm:$0xff] }
 0x4a3   :  { %v1221_v4 = vrot.slane %v1220_v26, 2  ;;  %v1233_v49 = vrot.slane %v1232_v44, 4  ;;  %v1225_v6 = vsel %vm60_vm0, %v1125_v37, 0.0  ;;  %v1210_v40 = vadd.f32 %v1209_v3, %v1208_v20  ;;  %v1427_v57 = vld [vmem:[%s2581_s2 + $0x38] sm:$0xff] }
 0x4a4   :  { %v1214_v7 = vrot.slane %v1213_v52, 2  ;;  %v1226_v9 = vrot.slane %v1225_v6, 4  ;;  %v1203_v0 = vadd.f32 %v1202_v15, %v1201_v58  ;;  %v1913_v47 = vpack.c.bf16 %v1425_v55, %v1424_v10  ;;  %v1517_v58 = vld [vmem:[%s2582_s3 + $0x8] sm:$0xff] }
 0x4a5   :  { %v1222_v46 = vadd.f32 %v1221_v4, %v1220_v26  ;;  %v1234_v12 = vadd.f32 %v1233_v49, %v1232_v44  ;;  %v1917_v26 = vpack.c.bf16 %v1427_v57, %v1426_v56  ;;  %v1518_v44 = vld [vmem:[%s2582_s3 + $0x10] sm:$0xff]  ;;  %v1921_v37 = vpack.c.bf16 %v1517_v58, %v1516_v61  ;;  %v1520_v4 = vld [vmem:[%s2582_s3 + $0x20] sm:$0xff] }
 0x4a6   :  { %v1215_v17 = vadd.f32 %v1214_v7, %v1213_v52  ;;  %v1227_v45 = vadd.f32 %v1226_v9, %v1225_v6  ;;  %v1274_v19 = vsel %vm1261_vm6, %v1203_v0, %v1273_v38  ;;  %1914 = vmatprep.subr.bf16.mxu0 %v1913_v47  ;;  %v1519_v38 = vld [vmem:[%s2582_s3 + $0x18] sm:$0xff]  ;;  %v1521_v52 = vld [vmem:[%s2582_s3 + $0x28] sm:$0xff]  ;;  %v1522_v49 = vld [vmem:[%s2582_s3 + $0x30] sm:$0xff] }
 0x4a7   :  { %v1223_v5 = vrot.slane %v1222_v46, 1  ;;  %v1235_v21 = vrot.slane %v1234_v12, 2  ;;  %v1275_v1 = vsel %vm1263_vm7, %v1210_v40, %v1274_v19  ;;  %v1925_v3 = vpack.c.bf16 %v1519_v38, %v1518_v44  ;;  %1922 = vmatprep.subr.bf16.mxu1 %v1921_v37  ;;  %v1523_v6 = vld [vmem:[%s2582_s3 + $0x38] sm:$0xff]  ;;  %v1524_v7 = vld [vmem:[%s2582_s3 + $0x40] sm:$0xff]  ;;  %v1525_v9 = vld [vmem:[%s2582_s3 + $0x48] sm:$0xff] }
 0x4a8   :  { %v1216_v54 = vrot.slane %v1215_v17, 1  ;;  %v1228_v8 = vrot.slane %v1227_v45, 2  ;;  %1924 = vmatpush3.bf16.msra.mxu1 %v1921_v37  ;;  %v1929_v15 = vpack.c.bf16 %v1521_v52, %v1520_v4  ;;  %v1937_v0 = vpack.c.bf16 %v1525_v9, %v1524_v7  ;;  %v1527_v40 = vld [vmem:[%s2582_s3 + $0x58] sm:$0xff]  ;;  %v1529_v19 = vld [vmem:[%s2582_s3 + $0x68] sm:$0xff] }
 0x4a9   :  { %v1236_v22 = vadd.f32 %v1235_v21, %v1234_v12  ;;  %v1224_v50 = vadd.f32 %v1223_v5, %v1222_v46  ;;  %1926 = vmatprep.subr.bf16.mxu1 %v1925_v3  ;;  %v1933_v46 = vpack.c.bf16 %v1523_v6, %v1522_v49  ;;  %v1526_v12 = vld [vmem:[%s2582_s3 + $0x50] sm:$0xff] }
 0x4aa   :  { %v1217_v36 = vadd.f32 %v1216_v54, %v1215_v17  ;;  %v1229_v23 = vadd.f32 %v1228_v8, %v1227_v45  ;;  %v1941_v17 = vpack.c.bf16 %v1527_v40, %v1526_v12  ;;  %v1528_v45 = vld [vmem:[%s2582_s3 + $0x60] sm:$0xff] }
 0x4ab   :  { %v1237_v59 = vrot.slane %v1236_v22, 1  ;;  %v1945_v5 = vpack.c.bf16 %v1529_v19, %v1528_v45 }
 0x4ac   :  { %v1276_v60 = vsel %vm1265_vm8, %v1217_v36, %v1275_v1  ;;  %v1230_v62 = vrot.slane %v1229_v23, 1  ;;  %1928 = vmatpush3.bf16.msra.mxu1 %v1925_v3 }
 0x4ad   :  { %v1277_v28 = vsel %vm1267_vm9, %v1224_v50, %v1276_v60  ;;  %v1238_v32 = vadd.f32 %v1237_v59, %v1236_v22  ;;  %1930 = vmatprep.subr.bf16.mxu1 %v1929_v15  ;;  %v1684_v50 = vld [vmem:[%s2580_s1 + $0x4] ss:$0 sm:$0xff]  ;;  %v1685_v60 = vld [vmem:[%s2580_s1 + $0x5] ss:$0 sm:$0xff] }
 0x4ae   :  { %v1231_v29 = vadd.f32 %v1230_v62, %v1229_v23 }
 0x4b0   :  { %v1278_v33 = vsel %vm1269_vm10, %v1231_v29, %v1277_v28  ;;  %1932 = vmatpush3.bf16.msra.mxu1 %v1929_v15 }
 0x4b1   :  { %v1279_v13 = vsel %vm1271_vm11, %v1238_v32, %v1278_v33  ;;  %1934 = vmatprep.subr.bf16.mxu1 %v1933_v46 }
 0x4b2   :  { %1841 = vmatmul.mubr.msk.f32.vlgmr.msra.gmra.mrb[16].mxu0 %vm60_vm0, %v1279_v13 }
 0x4b3   :  { %1916 = vmatpush3.bf16.msra.mxu0 %v1913_v47 }
 0x4b4   :  { %1918 = vmatprep.subr.bf16.mxu0 %v1917_v26  ;;  %1936 = vmatpush3.bf16.msra.mxu1 %v1933_v46 }
 0x4b5   :  { %1938 = vmatprep.subr.bf16.mxu1 %v1937_v0 }
 0x4b7   :  { %1920 = vmatpush3.bf16.msra.mxu0 %v1917_v26 }
 0x4b8   :  { %1940 = vmatpush3.bf16.msra.mxu1 %v1937_v0 }
 0x4b9   :  { %1942 = vmatprep.subr.bf16.mxu1 %v1941_v17 }
 0x4bc   :  { %1944 = vmatpush3.bf16.msra.mxu1 %v1941_v17 }
 0x4bd   :  { %1946 = vmatprep.subr.bf16.mxu1 %v1945_v5 }
 0x4c0   :  { %1948 = vmatpush3.bf16.msra.mxu1 %v1945_v5 }
 0x585   :  { %v1842_v34 = vpop.f32.mrb[16].mxu0 }
 0x586   :  { %v1376_v43 = vadd.f32 %v2044_v25, %v1842_v34  ;;  %v1366_v63 = vpop.f32.mrb[17].mxu0  ;;  %v1530_v34 = vld [vmem:[%s2582_s3 + $0x70] sm:$0xff] }
 0x587   :  { %v1375_v41 = vadd.f32 %v2045_v18, %v1366_v63 }
 0x588   :  { %v2472_v16 = vadd.f32 %v1683_v35, %v1376_v43  ;;  %v1686_v43 = vld [vmem:[%s2580_s1 + $0x6] ss:$0 sm:$0xff] }
 0x589   :  { %v2474_v42 = vadd.f32 %v1683_v35, %v1375_v41  ;;  %v1531_v35 = vld [vmem:[%s2582_s3 + $0x78] sm:$0xff]  ;;  %s2076_s3 = smov [#allocation2]  }
 0x58a   :  { %v1389_v14 = vsel %vm60_vm0, %v2472_v16, 0.0  ;;  %v1949_v25 = vpack.c.bf16 %v1531_v35, %v1530_v34  ;;  %s1623_s12 = sshll.u32 %s2076_s3, 4  ;;  %s1624_s12 = int_to_ptr.vmem [resolvable:$true] %s1623_s12 }
 0x58b   :  { %1390 = vadd.xlane.f32.xlu1 %v1389_v14  ;;  %v1386_v48 = vsel %vm60_vm0, %v2474_v42, 0.0  ;;  %s2046_s13 = scalar_lea.vmem %s1624_s12, 256  ;;  %p2051_p1 = scmp.lt.s32.totalorder %s1624_s12, %s1624_s12 }
 0x58c   :  { %1387 = vadd.xlane.f32.xlu0 %v1386_v48  ;;  %1950 = vmatprep.subr.bf16.mxu1 %v1949_v25  ;;  %p2047_p0 = scmp.ne.s32.totalorder %s1624_s12, %s2046_s13  ;;  %p2052_p2 = scmp.lt.s32.totalorder %s2046_s13, %s2046_s13 }
 0x58d   :  { %1952 = vmatpush3.bf16.msra.mxu1 %v1949_v25 }
 0x58e   :  { %p2053_p3 = por %p2052_p2, %p2051_p1 }
 0x590   :  { %p2054_p4 = pnand %p2053_p3, %p2047_p0 }
 0x618   :  { %v1391_v2 = vpop.xlane.xlu1 %1390 }
 0x619   :  { %v1393_v11 = vmul.f32 0.03125, %v1391_v2  ;;  %v1388_v24 = vpop.xlane.xlu0 %1387 }
 0x61a   :  { %v1392_v30 = vmul.f32 0.03125, %v1388_v24  ;;  %v1689_v24 = vld [vmem:[%s2580_s1 + $0x7] ss:$0 sm:$0xff] }
 0x61b   :  { %v2481_v39 = vsub.f32 %v2472_v16, %v1393_v11 }
 0x61c   :  { %v1394_v51 = vsub.f32 %v2474_v42, %v1392_v30 }
 0x61d   :  { %v1397_v31 = vmul.f32 %v2481_v39, %v2481_v39 }
 0x61e   :  { %v1396_v20 = vmul.f32 %v1394_v51, %v1394_v51 }
 0x61f   :  { %v1401_v27 = vsel %vm60_vm0, %v1397_v31, 0.0 }
 0x620   :  { %v1398_v53 = vsel %vm60_vm0, %v1396_v20, 0.0 }
 0x621   :  { %1399 = vadd.xlane.f32.xlu0 %v1398_v53 }
 0x625   :  { %1402 = vadd.xlane.f32.xlu0 %v1401_v27 }
 0x6ae   :  { %v1400_v21 = vpop.xlane.xlu0 %1399 }
 0x6af   :  { %v1404_v54 = vmul.f32 0.03125, %v1400_v21 }
 0x6b1   :  { %v1406_v1 = vadd.f32 1e-05, %v1404_v54 }
 0x6b2   :  { %v1403_v8 = vpop.xlane.xlu0 %1402 }
 0x6b3   :  { %2040 = vrsqrt.f32 %v1406_v1  ;;  %v1405_v22 = vmul.f32 0.03125, %v1403_v8 }
 0x6b5   :  { %v1407_v36 = vadd.f32 1e-05, %v1405_v22 }
 0x6b7   :  { %2042 = vrsqrt.f32 %v1407_v36 }
 0x6bd   :  { %v2041_v23 = vpop.eup %2040 }
 0x6be   :  { %v1410_v59 = vmul.f32 %v2041_v23, %v1394_v51 }
 0x6c0   :  { %v1416_v62 = vmul.f32 %v1684_v50, %v1410_v59 }
 0x6c1   :  { %v2043_v28 = vpop.eup %2042 }
 0x6c2   :  { %v1411_v29 = vmul.f32 %v2043_v28, %v2481_v39  ;;  %v1422_v32 = vadd.f32 %v1685_v60, %v1416_v62 }
 0x6c4   :  { %v1417_v33 = vmul.f32 %v1684_v50, %v1411_v29  ;;  %1851 = vmatprep.mubr.msk.f32.mxu0 %vm60_vm0, %v1422_v32 }
 0x6c6   :  { %v1423_v13 = vadd.f32 %v1685_v60, %v1417_v33 }
 0x6c8   :  { %1852 = vmatmul.mubr.msk.f32.vlgmr.msra.gmra.mrb[18].mxu0 %vm60_vm0, %v1423_v13 }
 0x79b   :  { %v1853_v63 = vpop.f32.mrb[18].mxu0 }
 0x79c   :  { %v1511_v18 = vadd.f32 %v1853_v63, %v1686_v43  ;;  %v1505_v41 = vpop.f32.mrb[19].mxu0 }
 0x79d   :  { %v1506_v14 = vadd.f32 %v1686_v43, %v1505_v41 }
 0x79e   :  { %v1515_v2 = vmax.f32 %v1511_v18, 0.0 }
 0x79f   :  { %v1514_v48 = vmax.f32 %v1506_v14, 0.0 }
 0x7a1   :  { %1886 = vmatprep.mubr.f32.mxu1 %v1514_v48 }
 0x7a2   :  { %1887 = vmatmul.mubr.f32.vlgmr.msra.gmra.mrb[18].mxu1 %v1515_v2 }
 0x875   :  { %v1888_v11 = vpop.f32.mrb[18].mxu1 }
 0x876   :  { %v1608_v30 = vadd.f32 %v1888_v11, %v2472_v16  ;;  %v1598_v39 = vpop.f32.mrb[19].mxu1 }
 0x877   :  { %v1607_v51 = vadd.f32 %v1598_v39, %v2474_v42 }
 0x878   :  { %v1615_v20 = vadd.f32 %v1689_v24, %v1608_v30 }
 0x879   :  { %v1614_v53 = vadd.f32 %v1689_v24, %v1607_v51 }
 0x87a   :  { %1617 = vst.msk [vmem:[#allocation2 + $0x8] sm:$0xff] %vm60_vm0, %v1615_v20 }
 0x87b   :  { %1616 = vst.msk [vmem:[#allocation2] sm:$0xff] %vm60_vm0, %v1614_v53 }
 0x87c   :  { %2057 = shalt.err (!%p2054_p4)
}
 0x87d   :  { %s2058_s15 = scalar_lea.hbm %s2583_s4, 256 }
 0x87e   :  { %p2059_p5 = scmp.ne.s32.totalorder %s2583_s4, %s2058_s15  ;;  %p2062_p6 = scmp.lt.u32.totalorder %s2058_s15, %s2583_s4 }
 0x880   :  { %p2064_p7 = pnand %p2062_p6, %p2059_p5 }
 0x882   :  { %2067 = shalt.err (!%p2064_p7)
}
 0x883   :  { %s2077_s0 = smov 128   ;;  %s2078_s20 = smov 8  }
 0x884   :  { %1629 = dma.vmem_to_hbm [thread:$0]  %s1624_s12, 256, %s2583_s4, [#allocation3], %s2077_s0, %s2077_s0, %s2078_s20  }
 0x885   :  { %2068 = dma.done.wait [#allocation3], 256  }
 0x886   :  { %2069 = vsyncadd [#allocation3], 4294967040 }
 0x887   :  { %1633 = vsyncpa [#allocation3], 1 }

</bundles_post_ra>
